<compile_context>
chip_gen: v6e
topology: v6e:2x2x1
jax: 0.10.0
libtpu: 0.0.40
codegen_flags: <defaults>
</compile_context>

<pallas_src>
import jax
import jax.numpy as jnp
from jax.experimental import pallas as pl
from jax.experimental.pallas import tpu as pltpu

IN_DIM = 28 * 28          # 784
HID = 512
LATENT = 2                # autoencoder hidden_dim
LAT_PAD = 128             # lane-dense padding of the latent


def _round_up(x, m):
    return ((x + m - 1) // m) * m


def ae_kernel(x_ref, w1_ref, b1_ref, w2_ref, b2_ref,
              w3_ref, b3_ref, w4_ref, b4_ref, o_ref):
    # Encoder.linear1 + relu
    x = x_ref[...].astype(jnp.bfloat16)                               # [B, 784]
    h = jnp.dot(x, w1_ref[...],
                preferred_element_type=jnp.float32) + b1_ref[...]     # [B, 512] f32
    h = jnp.maximum(h, 0.0)

    # Encoder.linear2 (latent, zero-padded to 128 lanes; padding is exact)
    z = jnp.dot(h.astype(jnp.bfloat16), w2_ref[...],
                preferred_element_type=jnp.float32) + b2_ref[...]     # [B, 128] f32

    # Decoder.linear1 + relu
    d = jnp.dot(z.astype(jnp.bfloat16), w3_ref[...],
                preferred_element_type=jnp.float32) + b3_ref[...]     # [B, 512] f32
    d = jnp.maximum(d, 0.0)

    # Decoder.linear2 + sigmoid (f32 EUP math; portable to v5e)
    y = jnp.dot(d.astype(jnp.bfloat16), w4_ref[...],
                preferred_element_type=jnp.float32) + b4_ref[...]     # [B, 784] f32
    o_ref[...] = jax.nn.sigmoid(y).astype(o_ref.dtype)


def init_params(key):
    """Plain f32 parameters mimicking nn.Linear's U(-1/sqrt(fan_in), ...).

    Weights are stored as [in, out]; biases as [1, out]."""
    def linear(k, fan_in, fan_out):
        kw, kb = jax.random.split(k)
        bound = 1.0 / jnp.sqrt(float(fan_in))
        w = jax.random.uniform(kw, (fan_in, fan_out), jnp.float32, -bound, bound)
        b = jax.random.uniform(kb, (1, fan_out), jnp.float32, -bound, bound)
        return w, b

    k1, k2, k3, k4 = jax.random.split(key, 4)
    w1, b1 = linear(k1, IN_DIM, HID)     # encoder.linear1
    w2, b2 = linear(k2, HID, LATENT)     # encoder.linear2
    w3, b3 = linear(k3, LATENT, HID)     # decoder.linear1
    w4, b4 = linear(k4, HID, IN_DIM)     # decoder.linear2
    return (w1, b1, w2, b2, w3, b3, w4, b4)


def prepare_kernel_params(params):
    """Zero-pad the latent dim (2->128) and cast weights to bf16.

    Zero padding is exact: padded latent lanes carry exactly zero through the
    decoder. Biases stay f32 (added after the f32-accumulated matmul)."""
    w1, b1, w2, b2, w3, b3, w4, b4 = params

    w1p = w1.astype(jnp.bfloat16)                                        # [784, 512]
    b1p = b1.astype(jnp.float32)                                         # [1, 512]

    w2p = jnp.pad(w2, ((0, 0), (0, LAT_PAD - LATENT))).astype(jnp.bfloat16)  # [512, 128]
    b2p = jnp.pad(b2, ((0, 0), (0, LAT_PAD - LATENT))).astype(jnp.float32)   # [1, 128]

    w3p = jnp.pad(w3, ((0, LAT_PAD - LATENT), (0, 0))).astype(jnp.bfloat16)  # [128, 512]
    b3p = b3.astype(jnp.float32)                                             # [1, 512]

    w4p = w4.astype(jnp.bfloat16)                                        # [512, 784]
    b4p = b4.astype(jnp.float32)                                         # [1, 784]

    return (w1p, b1p, w2p, b2p, w3p, b3p, w4p, b4p)


def autoencoder_forward(x, kernel_params, *, batch_tile=512):
    """x: [N, 1, 28, 28] float32 -> [N, 1, 28, 28] float32."""
    n = x.shape[0]
    x_flat = x.reshape(n, IN_DIM)          # free (bitcast) reshape, no HBM pass
    if x_flat.dtype != jnp.float32:
        x_flat = x_flat.astype(jnp.float32)

    # Batch tile: multiple of 16 (sublane-friendly for f32 and bf16), capped by
    # batch_tile.  Non-divisible N is handled by Pallas boundary blocks (OOB
    # reads unspecified but per-row independent; OOB writes discarded).
    bt = min(batch_tile, _round_up(n, 16))
    # v7x megacore: give each of the 2 TensorCores at least one grid step when
    # the batch is big enough (harmless on single-TC v5e/v6e).
    if n >= 32 and pl.cdiv(n, bt) < 2:
        bt = _round_up(pl.cdiv(n, 2), 16)
    grid = (pl.cdiv(n, bt),)

    w1, b1, w2, b2, w3, b3, w4, b4 = kernel_params

    def const_spec(shape):
        # Constant block index -> VMEM-resident across all grid steps.
        return pl.BlockSpec(shape, lambda i: (0, 0))

    out = pl.pallas_call(
        ae_kernel,
        out_shape=jax.ShapeDtypeStruct((n, IN_DIM), jnp.float32),
        grid=grid,
        in_specs=[
            pl.BlockSpec((bt, IN_DIM), lambda i: (i, 0)),   # x (batch-tiled)
            const_spec((IN_DIM, HID)),                      # w1 (resident)
            const_spec((1, HID)),                           # b1
            const_spec((HID, LAT_PAD)),                     # w2
            const_spec((1, LAT_PAD)),                       # b2
            const_spec((LAT_PAD, HID)),                     # w3
            const_spec((1, HID)),                           # b3
            const_spec((HID, IN_DIM)),                      # w4
            const_spec((1, IN_DIM)),                        # b4
        ],
        out_specs=pl.BlockSpec((bt, IN_DIM), lambda i: (i, 0)),
        compiler_params=pltpu.CompilerParams(
            dimension_semantics=("parallel",),
            vmem_limit_bytes=48 << 20,   # fits v7x's 64 MiB/TC with headroom
        ),
    )(x_flat, w1, b1, w2, b2, w3, b3, w4, b4)

    return out.reshape(n, 1, 28, 28)


def autoencoder_ref(x, params):
    """Pure-JAX f32 reference for correctness checking."""
    w1, b1, w2, b2, w3, b3, w4, b4 = params
    n = x.shape[0]
    h = jnp.maximum(x.reshape(n, IN_DIM) @ w1 + b1, 0.0)
    z = h @ w2 + b2
    d = jnp.maximum(z @ w3 + b3, 0.0)
    y = jax.nn.sigmoid(d @ w4 + b4)
    return y.reshape(n, 1, 28, 28)


if __name__ == "__main__":
    key = jax.random.PRNGKey(0)
    kx, kp = jax.random.split(key)

    N = 48
    x = jax.random.normal(kx, (N, 1, 28, 28), dtype=jnp.float32)
    params = init_params(kp)
    kernel_params = prepare_kernel_params(params)

    # batch_tile=16 at this small N exercises multiple pipelined grid steps.
    out = autoencoder_forward(x, kernel_params, batch_tile=16)
    out = jax.block_until_ready(out)

    ref = autoencoder_ref(x, params)
    assert out.shape == (N, 1, 28, 28)
    assert out.dtype == jnp.float32
    # bf16 MXU inputs with f32 accumulation -> relaxed tolerance vs f32 ref.
    assert jnp.allclose(out, ref, atol=2e-2, rtol=2e-2), (
        float(jnp.max(jnp.abs(out - ref))))

    print("KERNEL_OK")
</pallas_src>

<mosaic_0001>
module attributes {stable_mosaic.version = 11 : i64} {
  func.func @ae_kernel(%arg0: i32, %arg1: memref<16x784xf32, #tpu.memory_space<vmem>>, %arg2: memref<784x512xbf16, #tpu.memory_space<vmem>>, %arg3: memref<1x512xf32, #tpu.memory_space<vmem>>, %arg4: memref<512x128xbf16, #tpu.memory_space<vmem>>, %arg5: memref<1x128xf32, #tpu.memory_space<vmem>>, %arg6: memref<128x512xbf16, #tpu.memory_space<vmem>>, %arg7: memref<1x512xf32, #tpu.memory_space<vmem>>, %arg8: memref<512x784xbf16, #tpu.memory_space<vmem>>, %arg9: memref<1x784xf32, #tpu.memory_space<vmem>>, %arg10: memref<16x784xf32, #tpu.memory_space<vmem>>) attributes {dimension_semantics = [#tpu.dimension_semantics<parallel>], iteration_bounds = array<i64: 3>, scalar_prefetch = 0 : i64, scratch_operands = 0 : i64, tpu.core_type = #tpu.core_type<tc>, window_params = [{transform_indices = @transform_0, window_bounds = array<i64: 16, 784>}, {pipeline_mode = #tpu.pipeline_mode<synchronous>, transform_indices = @transform_1, window_bounds = array<i64: 784, 512>}, {pipeline_mode = #tpu.pipeline_mode<synchronous>, transform_indices = @transform_2, window_bounds = array<i64: 1, 512>}, {pipeline_mode = #tpu.pipeline_mode<synchronous>, transform_indices = @transform_3, window_bounds = array<i64: 512, 128>}, {pipeline_mode = #tpu.pipeline_mode<synchronous>, transform_indices = @transform_4, window_bounds = array<i64: 1, 128>}, {pipeline_mode = #tpu.pipeline_mode<synchronous>, transform_indices = @transform_5, window_bounds = array<i64: 128, 512>}, {pipeline_mode = #tpu.pipeline_mode<synchronous>, transform_indices = @transform_6, window_bounds = array<i64: 1, 512>}, {pipeline_mode = #tpu.pipeline_mode<synchronous>, transform_indices = @transform_7, window_bounds = array<i64: 512, 784>}, {pipeline_mode = #tpu.pipeline_mode<synchronous>, transform_indices = @transform_8, window_bounds = array<i64: 1, 784>}, {transform_indices = @transform_9, window_bounds = array<i64: 16, 784>}]} {
    %c0 = arith.constant 0 : index
    %c0_0 = arith.constant 0 : index
    %0 = vector.load %arg1[%c0, %c0_0] : memref<16x784xf32, #tpu.memory_space<vmem>>, vector<16x784xf32>
    %1 = arith.truncf %0 : vector<16x784xf32> to vector<16x784xbf16>
    %c0_1 = arith.constant 0 : index
    %c0_2 = arith.constant 0 : index
    %2 = vector.load %arg2[%c0_1, %c0_2] : memref<784x512xbf16, #tpu.memory_space<vmem>>, vector<784x512xbf16>
    %cst = arith.constant dense<0.000000e+00> : vector<16x512xf32>
    %3 = tpu.matmul %1, %2, %cst {dimension_numbers = #tpu.dot_dimension_numbers<[1], [0], [0], [1], [0, 0, 1, 1], [], []>} : vector<16x784xbf16>, vector<784x512xbf16>, vector<16x512xf32> -> vector<16x512xf32>
    %c0_3 = arith.constant 0 : index
    %c0_4 = arith.constant 0 : index
    %4 = vector.load %arg3[%c0_3, %c0_4] : memref<1x512xf32, #tpu.memory_space<vmem>>, vector<1x512xf32>
    %5 = vector.broadcast %4 : vector<1x512xf32> to vector<16x512xf32>
    %6 = arith.addf %3, %5 : vector<16x512xf32>
    %cst_5 = arith.constant 0.000000e+00 : f32
    %7 = vector.broadcast %cst_5 : f32 to vector<16x512xf32>
    %8 = arith.maximumf %6, %7 : vector<16x512xf32>
    %9 = arith.truncf %8 : vector<16x512xf32> to vector<16x512xbf16>
    %c0_6 = arith.constant 0 : index
    %c0_7 = arith.constant 0 : index
    %10 = vector.load %arg4[%c0_6, %c0_7] : memref<512x128xbf16, #tpu.memory_space<vmem>>, vector<512x128xbf16>
    %cst_8 = arith.constant dense<0.000000e+00> : vector<16x128xf32>
    %11 = tpu.matmul %9, %10, %cst_8 {dimension_numbers = #tpu.dot_dimension_numbers<[1], [0], [0], [1], [0, 0, 1, 1], [], []>} : vector<16x512xbf16>, vector<512x128xbf16>, vector<16x128xf32> -> vector<16x128xf32>
    %c0_9 = arith.constant 0 : index
    %c0_10 = arith.constant 0 : index
    %12 = vector.load %arg5[%c0_9, %c0_10] : memref<1x128xf32, #tpu.memory_space<vmem>>, vector<1x128xf32>
    %13 = vector.broadcast %12 : vector<1x128xf32> to vector<16x128xf32>
    %14 = arith.addf %11, %13 : vector<16x128xf32>
    %15 = arith.truncf %14 : vector<16x128xf32> to vector<16x128xbf16>
    %c0_11 = arith.constant 0 : index
    %c0_12 = arith.constant 0 : index
    %16 = vector.load %arg6[%c0_11, %c0_12] : memref<128x512xbf16, #tpu.memory_space<vmem>>, vector<128x512xbf16>
    %cst_13 = arith.constant dense<0.000000e+00> : vector<16x512xf32>
    %17 = tpu.matmul %15, %16, %cst_13 {dimension_numbers = #tpu.dot_dimension_numbers<[1], [0], [0], [1], [0, 0, 1, 1], [], []>} : vector<16x128xbf16>, vector<128x512xbf16>, vector<16x512xf32> -> vector<16x512xf32>
    %c0_14 = arith.constant 0 : index
    %c0_15 = arith.constant 0 : index
    %18 = vector.load %arg7[%c0_14, %c0_15] : memref<1x512xf32, #tpu.memory_space<vmem>>, vector<1x512xf32>
    %19 = vector.broadcast %18 : vector<1x512xf32> to vector<16x512xf32>
    %20 = arith.addf %17, %19 : vector<16x512xf32>
    %cst_16 = arith.constant 0.000000e+00 : f32
    %21 = vector.broadcast %cst_16 : f32 to vector<16x512xf32>
    %22 = arith.maximumf %20, %21 : vector<16x512xf32>
    %23 = arith.truncf %22 : vector<16x512xf32> to vector<16x512xbf16>
    %c0_17 = arith.constant 0 : index
    %c0_18 = arith.constant 0 : index
    %24 = vector.load %arg8[%c0_17, %c0_18] : memref<512x784xbf16, #tpu.memory_space<vmem>>, vector<512x784xbf16>
    %cst_19 = arith.constant dense<0.000000e+00> : vector<16x784xf32>
    %25 = tpu.matmul %23, %24, %cst_19 {dimension_numbers = #tpu.dot_dimension_numbers<[1], [0], [0], [1], [0, 0, 1, 1], [], []>} : vector<16x512xbf16>, vector<512x784xbf16>, vector<16x784xf32> -> vector<16x784xf32>
    %c0_20 = arith.constant 0 : index
    %c0_21 = arith.constant 0 : index
    %26 = vector.load %arg9[%c0_20, %c0_21] : memref<1x784xf32, #tpu.memory_space<vmem>>, vector<1x784xf32>
    %27 = vector.broadcast %26 : vector<1x784xf32> to vector<16x784xf32>
    %28 = arith.addf %25, %27 : vector<16x784xf32>
    %29 = arith.negf %28 : vector<16x784xf32>
    %30 = math.exp %29 : vector<16x784xf32>
    %cst_22 = arith.constant 1.000000e+00 : f32
    %31 = vector.broadcast %cst_22 : f32 to vector<16x784xf32>
    %32 = arith.addf %31, %30 : vector<16x784xf32>
    %33 = arith.divf %31, %32 : vector<16x784xf32>
    %c0_23 = arith.constant 0 : index
    %c0_24 = arith.constant 0 : index
    %34 = vector.load %arg10[%c0_23, %c0_24] : memref<16x784xf32, #tpu.memory_space<vmem>>, vector<16x784xf32>
    tpu.vector_store %arg10[%c0_23, %c0_24], %33 {strides = array<i32>} : memref<16x784xf32, #tpu.memory_space<vmem>>, vector<16x784xf32>,
    return
  }
  func.func @transform_0(%arg0: i32) -> (i32, i32) {
    %c0_i32 = arith.constant 0 : i32
    %c0_i32_0 = arith.constant 0 : i32
    return %arg0, %c0_i32 : i32, i32
  }
  func.func @transform_1(%arg0: i32) -> (i32, i32) {
    %c0_i32 = arith.constant 0 : i32
    %c0_i32_0 = arith.constant 0 : i32
    %c0_i32_1 = arith.constant 0 : i32
    return %c0_i32, %c0_i32_0 : i32, i32
  }
  func.func @transform_2(%arg0: i32) -> (i32, i32) {
    %c0_i32 = arith.constant 0 : i32
    %c0_i32_0 = arith.constant 0 : i32
    %c0_i32_1 = arith.constant 0 : i32
    return %c0_i32, %c0_i32_0 : i32, i32
  }
  func.func @transform_3(%arg0: i32) -> (i32, i32) {
    %c0_i32 = arith.constant 0 : i32
    %c0_i32_0 = arith.constant 0 : i32
    %c0_i32_1 = arith.constant 0 : i32
    return %c0_i32, %c0_i32_0 : i32, i32
  }
  func.func @transform_4(%arg0: i32) -> (i32, i32) {
    %c0_i32 = arith.constant 0 : i32
    %c0_i32_0 = arith.constant 0 : i32
    %c0_i32_1 = arith.constant 0 : i32
    return %c0_i32, %c0_i32_0 : i32, i32
  }
  func.func @transform_5(%arg0: i32) -> (i32, i32) {
    %c0_i32 = arith.constant 0 : i32
    %c0_i32_0 = arith.constant 0 : i32
    %c0_i32_1 = arith.constant 0 : i32
    return %c0_i32, %c0_i32_0 : i32, i32
  }
  func.func @transform_6(%arg0: i32) -> (i32, i32) {
    %c0_i32 = arith.constant 0 : i32
    %c0_i32_0 = arith.constant 0 : i32
    %c0_i32_1 = arith.constant 0 : i32
    return %c0_i32, %c0_i32_0 : i32, i32
  }
  func.func @transform_7(%arg0: i32) -> (i32, i32) {
    %c0_i32 = arith.constant 0 : i32
    %c0_i32_0 = arith.constant 0 : i32
    %c0_i32_1 = arith.constant 0 : i32
    return %c0_i32, %c0_i32_0 : i32, i32
  }
  func.func @transform_8(%arg0: i32) -> (i32, i32) {
    %c0_i32 = arith.constant 0 : i32
    %c0_i32_0 = arith.constant 0 : i32
    %c0_i32_1 = arith.constant 0 : i32
    return %c0_i32, %c0_i32_0 : i32, i32
  }
  func.func @transform_9(%arg0: i32) -> (i32, i32) {
    %c0_i32 = arith.constant 0 : i32
    %c0_i32_0 = arith.constant 0 : i32
    return %arg0, %c0_i32 : i32, i32
  }
}

</mosaic_0001>

<bundles_post_ra>
// kernel: tpu_custom_call.1
= control target key start
LH: loop header
LB: loop body
LE: loop exit
PB: predicated region body
PF: predicated region fallthrough
CT: control target
= control target key end

     0   :  { %14 = vsyncpa [#allocation3], 0  ;;  %s7746_s0 = inlined_call_operand.vmem [shape: f32[48,784], index: 0, kind: input, shape index: {}]   ;;  %s7747_s1 = inlined_call_operand.vmem [shape: bf16[784,512], index: 1, kind: input, shape index: {}]   ;;  %s7748_s2 = inlined_call_operand.vmem [shape: f32[1,512], index: 2, kind: input, shape index: {}]   ;;  %s7749_s3 = inlined_call_operand.vmem [shape: bf16[512,128], index: 3, kind: input, shape index: {}]   ;;  %s7750_s4 = inlined_call_operand.vmem [shape: f32[1,128], index: 4, kind: input, shape index: {}]   ;;  %s7751_s5 = inlined_call_operand.vmem [shape: bf16[128,512], index: 5, kind: input, shape index: {}]   ;;  %s7752_s6 = inlined_call_operand.vmem [shape: f32[1,512], index: 6, kind: input, shape index: {}]   ;;  %s7753_s7 = inlined_call_operand.vmem [shape: bf16[512,784], index: 7, kind: input, shape index: {}]   ;;  %s7754_s8 = inlined_call_operand.vmem [shape: f32[1,784], index: 8, kind: input, shape index: {}]   ;;  %s7755_s9 = inlined_call_operand.hbm [shape: f32[48,784], index: 9, kind: output, shape index: {}]  }
   0x1   :  { %16 = vsyncpa [#allocation3 + $0x1], 0  ;;  %s6046_s30 = smov 0   ;;  %s6048_s10 = smov 0  }
   0x2   :  { %s6050_s11 = smov 0   ;;  %s6052_s12 = smov 0  }
   0x3 LB: > { %s6067_s13 = sadd.s32 4294967295, %s5990_s12   ;;  %s4535_s14 = sadd.s32 4294967294, %s5990_s12   ;;  %s5990_s12 = sphi %s6052_s12, %s7761_s12   ;;  %s5986_s11 = sphi %s6050_s11, %s7760_s11   ;;  %s5982_s10 = sphi %s6048_s10, %s7759_s10   ;;  %s5978_s30 = sphi %s6046_s30, %s7758_s30  }
   0x4   : > { %s6071_s15 = sadd.s32 1, %s5990_s12   ;;  %s223_s16 = sadd.s32 1, %s5986_s11 }
   0x5   : > { %s220_s17 = ssub.s32 %s5990_s12, %s6071_s15  ;;  %p233_p0 = scmp.ne.s32.totalorder %s5986_s11, %s5982_s10 }
   0x6   : > { %p221_p1 = scmp.eq.s32.totalorder %s220_s17, 0  ;;  %p234_p2 = scmp.eq.s32.totalorder %s6067_s13, 2 }
   0x7   : > { %p239_p3 = scmp.ne.s32.totalorder %s5982_s10, %s5978_s30  ;;  %p240_p4 = scmp.eq.s32.totalorder %s4535_s14, 2 }
   0x8   : > { %s6082_s18 = scalar_select %p221_p1, %s5986_s11, %s223_s16  }
   0x9   : > { %p6084_p5 = por %p234_p2, %p233_p0  ;;  %p6088_p6 = por %p240_p4, %p239_p3 }
   0xa   : > { %p4538_p7 = scmp.ge.s32.totalorder %s5990_s12, 1  ;;  %p292_p8 = scmp.lt.s32.totalorder %s5990_s12, 4 }
   0xc   : > { %p293_p9 = pnand %p4538_p7, %p292_p8 }
   0xd   : > { %s4539_s16 = sshll.u32 (!%p293_p9), %s6067_s13, 1  ;;  %s326_s24 = sand.u32 (!%p293_p9), 1, %s5982_s10  }
   0xe   : > { %296 = sbr.rel (%p293_p9) target bundleno = 1251 (0x4e3), region = 56  ;;  %p330_p10 = scmp.lt.s32.totalorder (!%p293_p9), %s4539_s16, 5 }
   0xf   : > { %s7706_s14 = scalar_lea.sflag (!%p293_p9), [#allocation3], %s326_s24  ;;  %s5993_s21 = smov (!%p293_p9), [#allocation2]  }
  0x10   : > { %s5934_s22 = sshll.u32 (!%p293_p9), %s5993_s21, 4  ;;  %s5935_s22 = int_to_ptr.vmem [resolvable:$false] %s5934_s22 }
  0x11   : > { %s5936_s23 = scalar_lea.vmem (!%p293_p9), %s5935_s22, 3584 }
  0x13   : > { %v5180_v0 = vld [vmem:[%s7747_s1 + $0xe4] ss:$16 sps:$4 sm:$0xff]   ;;  %v5184_v2 = vld [vmem:[%s7747_s1 + $0xe0] ss:$16 sps:$4 sm:$0xff]   ;;  %s7763_s16 = smov (!%p330_p10, %s4539_s16), 5  ;;  %vm1557_vm0 = vcmask 130048  }
  0x14   : > { %v5182_v1 = vld [vmem:[%s7747_s1 + $0x2e4] ss:$16 sps:$4 sm:$0xff]   ;;  %1561 = vmatprep.subr.bf16.mxu0 %v5180_v0  ;;  %v5185_v3 = vld [vmem:[%s7747_s1 + $0x2e0] ss:$16 sps:$4 sm:$0xff]   ;;  %s5136_s29 = smul.u32 56, %s7763_s16 }
  0x15   : > { %1604 = vmatprep.subr.bf16.mxu1 %v5182_v1  ;;  %v5186_v4 = vld [vmem:[%s7747_s1 + $0xc4] ss:$16 sps:$4 sm:$0xff]   ;;  %1562 = vmatpush1.bf16.msra.mxu0 %v5184_v2  ;;  %v5190_v6 = vld [vmem:[%s7747_s1 + $0xc0] ss:$16 sps:$4 sm:$0xff]  }
  0x16   : > { %1605 = vmatpush1.bf16.msra.mxu1 %v5185_v3  ;;  %v5188_v5 = vld [vmem:[%s7747_s1 + $0x2c4] ss:$16 sps:$4 sm:$0xff]   ;;  %1563 = vmatprep.subr.bf16.mxu0 %v5186_v4  ;;  %v5191_v7 = vld [vmem:[%s7747_s1 + $0x2c0] ss:$16 sps:$4 sm:$0xff]   ;;  %s6230_s17 = scalar_lea.vmem %s7746_s0, %s5136_s29  ;;  %s5135_s29 = smul.u32 112, %s326_s24 }
  0x17   : > { %1606 = vmatprep.subr.bf16.mxu1 %v5188_v5  ;;  %v5192_v8 = vld [vmem:[%s7747_s1 + $0xa4] ss:$16 sps:$4 sm:$0xff]   ;;  %v5196_v10 = vld [vmem:[%s7747_s1 + $0xa0] ss:$16 sps:$4 sm:$0xff]   ;;  %v339_v46 = vld [vmem:[%s6230_s17 + $0x8] sm:$0xff] }
  0x18   : > { %v5194_v9 = vld [vmem:[%s7747_s1 + $0x2a4] ss:$16 sps:$4 sm:$0xff]   ;;  %v5197_v11 = vld [vmem:[%s7747_s1 + $0x2a0] ss:$16 sps:$4 sm:$0xff]   ;;  %v341_v48 = vld [vmem:[%s6230_s17 + $0x18] sm:$0xff]  ;;  %s7667_s25 = scalar_lea.vmem [#allocation2], %s5135_s29 }
  0x19   : > { %1564 = vmatpush1.bf16.msra.mxu0 %v5190_v6  ;;  %v5198_v12 = vld [vmem:[%s7747_s1 + $0x84] ss:$16 sps:$4 sm:$0xff]   ;;  %v5202_v14 = vld [vmem:[%s7747_s1 + $0x80] ss:$16 sps:$4 sm:$0xff]   ;;  %s4473_s26 = sshll.u32 %s7667_s25, 4  ;;  %s7695_s26 = int_to_ptr.vmem [resolvable:$true] %s4473_s26 }
  0x1a   : > { %1607 = vmatpush1.bf16.msra.mxu1 %v5191_v7  ;;  %1565 = vmatprep.subr.bf16.mxu0 %v5192_v8  ;;  %v5200_v13 = vld [vmem:[%s7747_s1 + $0x284] ss:$16 sps:$4 sm:$0xff]   ;;  %v5203_v15 = vld [vmem:[%s7747_s1 + $0x280] ss:$16 sps:$4 sm:$0xff]   ;;  %v345_v7 = vld [vmem:[%s6230_s17 + $0x38] sm:$0xff]  ;;  %p5937_p0 = scmp.lt.s32.totalorder %s7695_s26, %s5935_s22 }
  0x1b   : > { %1608 = vmatprep.subr.bf16.mxu1 %v5194_v9  ;;  %v5204_v16 = vld [vmem:[%s7747_s1 + $0x64] ss:$16 sps:$4 sm:$0xff]   ;;  %v5208_v18 = vld [vmem:[%s7747_s1 + $0x60] ss:$16 sps:$4 sm:$0xff]   ;;  %v347_v9 = vld [vmem:[%s6230_s17 + $0x48] sm:$0xff] }
  0x1c   : > { %v5206_v17 = vld [vmem:[%s7747_s1 + $0x264] ss:$16 sps:$4 sm:$0xff]   ;;  %v5209_v19 = vld [vmem:[%s7747_s1 + $0x260] ss:$16 sps:$4 sm:$0xff]  }
  0x1d   : > { %1566 = vmatpush1.bf16.msra.mxu0 %v5196_v10  ;;  %v5210_v20 = vld [vmem:[%s7747_s1 + $0x44] ss:$16 sps:$4 sm:$0xff]   ;;  %v5214_v22 = vld [vmem:[%s7747_s1 + $0x40] ss:$16 sps:$4 sm:$0xff]  }
  0x1e   : > { %1609 = vmatpush1.bf16.msra.mxu1 %v5197_v11  ;;  %1567 = vmatprep.subr.bf16.mxu0 %v5198_v12  ;;  %v5212_v21 = vld [vmem:[%s7747_s1 + $0x244] ss:$16 sps:$4 sm:$0xff]   ;;  %v5215_v23 = vld [vmem:[%s7747_s1 + $0x240] ss:$16 sps:$4 sm:$0xff]  }
  0x1f   : > { %1610 = vmatprep.subr.bf16.mxu1 %v5200_v13  ;;  %v5216_v24 = vld [vmem:[%s7747_s1 + $0x24] ss:$16 sps:$4 sm:$0xff]   ;;  %v5220_v26 = vld [vmem:[%s7747_s1 + $0x20] ss:$16 sps:$4 sm:$0xff]  }
  0x20   : > { %v5218_v25 = vld [vmem:[%s7747_s1 + $0x224] ss:$16 sps:$4 sm:$0xff]   ;;  %v5221_v27 = vld [vmem:[%s7747_s1 + $0x220] ss:$16 sps:$4 sm:$0xff]  }
  0x21   : > { %1568 = vmatpush1.bf16.msra.mxu0 %v5202_v14  ;;  %v5222_v28 = vld [vmem:[%s7747_s1 + $0x4] ss:$16 sps:$4 sm:$0xff]   ;;  %v5226_v30 = vld [vmem:[%s7747_s1] ss:$16 sps:$4 sm:$0xff]  }
  0x22   : > { %1611 = vmatpush1.bf16.msra.mxu1 %v5203_v15  ;;  %1569 = vmatprep.subr.bf16.mxu0 %v5204_v16  ;;  %v5224_v29 = vld [vmem:[%s7747_s1 + $0x204] ss:$16 sps:$4 sm:$0xff]   ;;  %v5227_v31 = vld [vmem:[%s7747_s1 + $0x200] ss:$16 sps:$4 sm:$0xff]  }
  0x23   : > { %1612 = vmatprep.subr.bf16.mxu1 %v5206_v17  ;;  %v5228_v32 = vld [vmem:[%s7747_s1 + $0x1e4] ss:$16 sps:$4 sm:$0xff]   ;;  %v5232_v34 = vld [vmem:[%s7747_s1 + $0x1e0] ss:$16 sps:$4 sm:$0xff]   ;;  %v5287_v17 = vld [vmem:[%s7747_s1 + $0xec] ss:$16 sps:$4 sm:$0xff]  }
  0x24   : > { %v5230_v33 = vld [vmem:[%s7747_s1 + $0x3e4] ss:$16 sps:$4 sm:$0xff]   ;;  %v5233_v35 = vld [vmem:[%s7747_s1 + $0x3e0] ss:$16 sps:$4 sm:$0xff]  }
  0x25   : > { %1570 = vmatpush1.bf16.msra.mxu0 %v5208_v18  ;;  %v5234_v36 = vld [vmem:[%s7747_s1 + $0x1c4] ss:$16 sps:$4 sm:$0xff]   ;;  %v5238_v38 = vld [vmem:[%s7747_s1 + $0x1c0] ss:$16 sps:$4 sm:$0xff]  }
  0x26   : > { %1613 = vmatpush1.bf16.msra.mxu1 %v5209_v19  ;;  %1571 = vmatprep.subr.bf16.mxu0 %v5210_v20  ;;  %v5236_v37 = vld [vmem:[%s7747_s1 + $0x3c4] ss:$16 sps:$4 sm:$0xff]   ;;  %v5239_v39 = vld [vmem:[%s7747_s1 + $0x3c0] ss:$16 sps:$4 sm:$0xff]   ;;  %v351_v20 = vld [vmem:[%s6230_s17 + $0x68] sm:$0xff] }
  0x27   : > { %1614 = vmatprep.subr.bf16.mxu1 %v5212_v21  ;;  %v5240_v40 = vld [vmem:[%s7747_s1 + $0x1a4] ss:$16 sps:$4 sm:$0xff]   ;;  %v5244_v42 = vld [vmem:[%s7747_s1 + $0x1a0] ss:$16 sps:$4 sm:$0xff]   ;;  %v5992_v21 = vmov 0  }
  0x28   : > { %v5242_v41 = vld [vmem:[%s7747_s1 + $0x3a4] ss:$16 sps:$4 sm:$0xff]   ;;  %v5245_v43 = vld [vmem:[%s7747_s1 + $0x3a0] ss:$16 sps:$4 sm:$0xff]  }
  0x29   : > { %1572 = vmatpush1.bf16.msra.mxu0 %v5214_v22  ;;  %v5246_v44 = vld [vmem:[%s7747_s1 + $0x184] ss:$16 sps:$4 sm:$0xff]   ;;  %v5250_v50 = vld [vmem:[%s7747_s1 + $0x180] ss:$16 sps:$4 sm:$0xff]  }
  0x2a   : > { %1615 = vmatpush1.bf16.msra.mxu1 %v5215_v23  ;;  %1573 = vmatprep.subr.bf16.mxu0 %v5216_v24  ;;  %v5248_v45 = vld [vmem:[%s7747_s1 + $0x384] ss:$16 sps:$4 sm:$0xff]   ;;  %v5251_v51 = vld [vmem:[%s7747_s1 + $0x380] ss:$16 sps:$4 sm:$0xff]   ;;  %v5285_v24 = vld [vmem:[%s7747_s1 + $0xe8] ss:$16 sps:$4 sm:$0xff]  }
  0x2b   : > { %1616 = vmatprep.subr.bf16.mxu1 %v5218_v25  ;;  %v346_v47 = vld [vmem:[%s6230_s17 + $0x40] sm:$0xff]  ;;  %v348_v49 = vld [vmem:[%s6230_s17 + $0x50] sm:$0xff] }
  0x2c   : > { %v5252_v52 = vld [vmem:[%s7747_s1 + $0x164] ss:$16 sps:$4 sm:$0xff]   ;;  %v6251_v53 = vpack.c.bf16 %v346_v47, %v339_v46  ;;  %v6253_v54 = vpack.c.bf16 %v348_v49, %v341_v48  ;;  %v5256_v56 = vld [vmem:[%s7747_s1 + $0x160] ss:$16 sps:$4 sm:$0xff]   ;;  %v5315_v47 = vld [vmem:[%s7747_s1 + $0x48] ss:$16 sps:$4 sm:$0xff]  }
  0x2d   : > { %1574 = vmatpush1.bf16.msra.mxu0 %v5220_v26  ;;  %v5254_v55 = vld [vmem:[%s7747_s1 + $0x364] ss:$16 sps:$4 sm:$0xff]   ;;  %v5257_v57 = vld [vmem:[%s7747_s1 + $0x360] ss:$16 sps:$4 sm:$0xff]   ;;  %v5293_v26 = vld [vmem:[%s7747_s1 + $0xcc] ss:$16 sps:$4 sm:$0xff]  }
  0x2e   : > { %1617 = vmatpush1.bf16.msra.mxu1 %v5221_v27  ;;  %1575 = vmatprep.subr.bf16.mxu0 %v5222_v28  ;;  %v5258_v58 = vld [vmem:[%s7747_s1 + $0x144] ss:$16 sps:$4 sm:$0xff]   ;;  %v5262_v60 = vld [vmem:[%s7747_s1 + $0x140] ss:$16 sps:$4 sm:$0xff]   ;;  %v5291_v28 = vld [vmem:[%s7747_s1 + $0xc8] ss:$16 sps:$4 sm:$0xff]  }
  0x2f   : > { %1618 = vmatprep.subr.bf16.mxu1 %v5224_v29  ;;  %1593 = vmatprep.mubr.bf16.mxu0 %v6251_v53  ;;  %v5260_v59 = vld [vmem:[%s7747_s1 + $0x344] ss:$16 sps:$4 sm:$0xff]   ;;  %v5263_v61 = vld [vmem:[%s7747_s1 + $0x340] ss:$16 sps:$4 sm:$0xff]   ;;  %v5323_v49 = vld [vmem:[%s7747_s1 + $0x2c] ss:$16 sps:$4 sm:$0xff]  }
  0x30   : > { %1636 = vmatprep.mubr.bf16.mxu1 %v6253_v54  ;;  %v5264_v62 = vld [vmem:[%s7747_s1 + $0x124] ss:$16 sps:$4 sm:$0xff]   ;;  %v5268_v0 = vld [vmem:[%s7747_s1 + $0x120] ss:$16 sps:$4 sm:$0xff]  }
  0x31   : > { %1576 = vmatpush1.bf16.msra.mxu0 %v5226_v30  ;;  %v5266_v63 = vld [vmem:[%s7747_s1 + $0x324] ss:$16 sps:$4 sm:$0xff]   ;;  %v5269_v1 = vld [vmem:[%s7747_s1 + $0x320] ss:$16 sps:$4 sm:$0xff]   ;;  %v5299_v30 = vld [vmem:[%s7747_s1 + $0xac] ss:$16 sps:$4 sm:$0xff]  }
  0x32   : > { %1619 = vmatpush1.bf16.msra.mxu1 %v5227_v31  ;;  %1577 = vmatprep.subr.bf16.mxu0 %v5228_v32  ;;  %v5270_v2 = vld [vmem:[%s7747_s1 + $0x104] ss:$16 sps:$4 sm:$0xff]   ;;  %v5274_v4 = vld [vmem:[%s7747_s1 + $0x100] ss:$16 sps:$4 sm:$0xff]   ;;  %v5297_v32 = vld [vmem:[%s7747_s1 + $0xa8] ss:$16 sps:$4 sm:$0xff]  }
  0x33   : > { %1620 = vmatprep.subr.bf16.mxu1 %v5230_v33  ;;  %v5272_v3 = vld [vmem:[%s7747_s1 + $0x304] ss:$16 sps:$4 sm:$0xff]   ;;  %v5275_v5 = vld [vmem:[%s7747_s1 + $0x300] ss:$16 sps:$4 sm:$0xff]  }
  0x34   : > { %v338_v6 = vld [vmem:[%s6230_s17] sm:$0xff]  ;;  %v340_v8 = vld [vmem:[%s6230_s17 + $0x10] sm:$0xff] }
  0x35   : > { %1578 = vmatpush2.bf16.msra.mxu0 %v5232_v34  ;;  %v5278_v10 = vld [vmem:[%s7747_s1 + $0x4e4] ss:$16 sps:$4 sm:$0xff]   ;;  %v6312_v12 = vpack.c.bf16 %v345_v7, %v338_v6  ;;  %v6314_v13 = vpack.c.bf16 %v347_v9, %v340_v8  ;;  %v5276_v14 = vld [vmem:[%s7747_s1 + $0x4e0] ss:$16 sps:$4 sm:$0xff]   ;;  %v5305_v34 = vld [vmem:[%s7747_s1 + $0x8c] ss:$16 sps:$4 sm:$0xff]  }
  0x36   : > { %1621 = vmatpush2.bf16.msra.mxu1 %v5233_v35  ;;  %1579 = vmatprep.subr.bf16.mxu0 %v5234_v36  ;;  %v5281_v11 = vld [vmem:[%s7747_s1 + $0x604] ss:$16 sps:$4 sm:$0xff]   ;;  %v5279_v15 = vld [vmem:[%s7747_s1 + $0x600] ss:$16 sps:$4 sm:$0xff]   ;;  %v5303_v36 = vld [vmem:[%s7747_s1 + $0x88] ss:$16 sps:$4 sm:$0xff]  }
  0x37   : > { %1622 = vmatprep.subr.bf16.mxu1 %v5236_v37  ;;  %v5284_v16 = vld [vmem:[%s7747_s1 + $0x4c4] ss:$16 sps:$4 sm:$0xff]   ;;  %v5282_v18 = vld [vmem:[%s7747_s1 + $0x4c0] ss:$16 sps:$4 sm:$0xff]   ;;  %v5353_v6 = vld [vmem:[%s7747_s1 + $0x18c] ss:$16 sps:$4 sm:$0xff]  }
  0x38   : > { %v344_v19 = vld [vmem:[%s6230_s17 + $0x30] sm:$0xff]  ;;  %v5351_v8 = vld [vmem:[%s7747_s1 + $0x188] ss:$16 sps:$4 sm:$0xff]  }
  0x39   : > { %1580 = vmatpush2.bf16.msra.mxu0 %v5238_v38  ;;  %v5290_v22 = vld [vmem:[%s7747_s1 + $0x4a4] ss:$16 sps:$4 sm:$0xff]   ;;  %v6339_v23 = vpack.c.bf16 %v351_v20, %v344_v19  ;;  %v5288_v25 = vld [vmem:[%s7747_s1 + $0x4a0] ss:$16 sps:$4 sm:$0xff]   ;;  %v5311_v38 = vld [vmem:[%s7747_s1 + $0x6c] ss:$16 sps:$4 sm:$0xff]  }
  0x3a   : > { %1623 = vmatpush2.bf16.msra.mxu1 %v5239_v39  ;;  %1581 = vmatprep.subr.bf16.mxu0 %v5240_v40  ;;  %v5296_v27 = vld [vmem:[%s7747_s1 + $0x484] ss:$16 sps:$4 sm:$0xff]   ;;  %v5294_v29 = vld [vmem:[%s7747_s1 + $0x480] ss:$16 sps:$4 sm:$0xff]   ;;  %v5309_v40 = vld [vmem:[%s7747_s1 + $0x68] ss:$16 sps:$4 sm:$0xff]  }
  0x3b   : > { %1624 = vmatprep.subr.bf16.mxu1 %v5242_v41  ;;  %v5302_v31 = vld [vmem:[%s7747_s1 + $0x464] ss:$16 sps:$4 sm:$0xff]   ;;  %v5300_v33 = vld [vmem:[%s7747_s1 + $0x460] ss:$16 sps:$4 sm:$0xff]   ;;  %v343_v41 = vld [vmem:[%s6230_s17 + $0x28] sm:$0xff] }
  0x3c   : > { %v5308_v35 = vld [vmem:[%s7747_s1 + $0x444] ss:$16 sps:$4 sm:$0xff]   ;;  %v5306_v37 = vld [vmem:[%s7747_s1 + $0x440] ss:$16 sps:$4 sm:$0xff]  }
  0x3d   : > { %1582 = vmatpush2.bf16.msra.mxu0 %v5244_v42  ;;  %v5314_v39 = vld [vmem:[%s7747_s1 + $0x424] ss:$16 sps:$4 sm:$0xff]   ;;  %v5318_v48 = vld [vmem:[%s7747_s1 + $0x400] ss:$16 sps:$4 sm:$0xff]  }
  0x3e   : > { %1625 = vmatpush2.bf16.msra.mxu1 %v5245_v43  ;;  %1583 = vmatprep.subr.bf16.mxu0 %v5246_v44  ;;  %v350_v42 = vld [vmem:[%s6230_s17 + $0x60] sm:$0xff] }
  0x3f   : > { %1626 = vmatprep.subr.bf16.mxu1 %v5248_v45  ;;  %v5312_v43 = vld [vmem:[%s7747_s1 + $0x420] ss:$16 sps:$4 sm:$0xff]   ;;  %v6400_v44 = vpack.c.bf16 %v350_v42, %v343_v41  ;;  %v5317_v45 = vld [vmem:[%s7747_s1 + $0x4c] ss:$16 sps:$4 sm:$0xff]   ;;  %v5320_v46 = vld [vmem:[%s7747_s1 + $0x404] ss:$16 sps:$4 sm:$0xff]  }
  0x40   : > { %v5356_v7 = vld [vmem:[%s7747_s1 + $0x544] ss:$16 sps:$4 sm:$0xff]   ;;  %v5354_v9 = vld [vmem:[%s7747_s1 + $0x540] ss:$16 sps:$4 sm:$0xff]   ;;  %v5398_v41 = vld [vmem:[%s7747_s1 + $0x26c] ss:$16 sps:$4 sm:$0xff]  }
  0x41   : > { %1584 = vmatpush2.bf16.msra.mxu0 %v5250_v50  ;;  %v5326_v50 = vld [vmem:[%s7747_s1 + $0x5e4] ss:$16 sps:$4 sm:$0xff]   ;;  %v5366_v19 = vld [vmem:[%s7747_s1 + $0x500] ss:$16 sps:$4 sm:$0xff]   ;;  %v5393_v42 = vld [vmem:[%s7747_s1 + $0x4a8] ss:$16 sps:$4 sm:$0xff]  }
  0x42   : > { %1627 = vmatpush2.bf16.msra.mxu1 %v5251_v51  ;;  %1585 = vmatprep.subr.bf16.mxu0 %v5252_v52  ;;  %v5321_v51 = vld [vmem:[%s7747_s1 + $0x28] ss:$16 sps:$4 sm:$0xff]   ;;  %v5324_v52 = vld [vmem:[%s7747_s1 + $0x5e0] ss:$16 sps:$4 sm:$0xff]  }
  0x43   : > { %1628 = vmatprep.subr.bf16.mxu1 %v5254_v55  ;;  %v5332_v55 = vld [vmem:[%s7747_s1 + $0x5c4] ss:$16 sps:$4 sm:$0xff]  }
  0x44   : > { %v342_v20 = vld [vmem:[%s6230_s17 + $0x20] sm:$0xff] }
  0x45   : > { %1586 = vmatpush2.bf16.msra.mxu0 %v5256_v56  ;;  %v5327_v56 = vld [vmem:[%s7747_s1 + $0x8] ss:$16 sps:$4 sm:$0xff]  }
  0x46   : > { %1629 = vmatpush2.bf16.msra.mxu1 %v5257_v57  ;;  %1587 = vmatprep.subr.bf16.mxu0 %v5258_v58  ;;  %v5330_v57 = vld [vmem:[%s7747_s1 + $0x5c0] ss:$16 sps:$4 sm:$0xff]   ;;  %v5335_v58 = vld [vmem:[%s7747_s1 + $0x1ec] ss:$16 sps:$4 sm:$0xff]  }
  0x47   : > { %1630 = vmatprep.subr.bf16.mxu1 %v5260_v59  ;;  %v5338_v59 = vld [vmem:[%s7747_s1 + $0x5a4] ss:$16 sps:$4 sm:$0xff]  }
  0x49   : > { %1588 = vmatpush2.bf16.msra.mxu0 %v5262_v60  ;;  %v5333_v60 = vld [vmem:[%s7747_s1 + $0x1e8] ss:$16 sps:$4 sm:$0xff]  }
  0x4a   : > { %1631 = vmatpush2.bf16.msra.mxu1 %v5263_v61  ;;  %1589 = vmatprep.subr.bf16.mxu0 %v5264_v62  ;;  %v5336_v61 = vld [vmem:[%s7747_s1 + $0x5a0] ss:$16 sps:$4 sm:$0xff]   ;;  %v5341_v62 = vld [vmem:[%s7747_s1 + $0x1cc] ss:$16 sps:$4 sm:$0xff]  }
  0x4b   : > { %1632 = vmatprep.subr.bf16.mxu1 %v5266_v63  ;;  %v5344_v63 = vld [vmem:[%s7747_s1 + $0x584] ss:$16 sps:$4 sm:$0xff]  }
  0x4d   : > { %1590 = vmatpush2.bf16.msra.mxu0 %v5268_v0  ;;  %v5339_v0 = vld [vmem:[%s7747_s1 + $0x1c8] ss:$16 sps:$4 sm:$0xff]  }
  0x4e   : > { %1633 = vmatpush2.bf16.msra.mxu1 %v5269_v1  ;;  %1591 = vmatprep.subr.bf16.mxu0 %v5270_v2  ;;  %v5342_v1 = vld [vmem:[%s7747_s1 + $0x580] ss:$16 sps:$4 sm:$0xff]   ;;  %v5347_v2 = vld [vmem:[%s7747_s1 + $0x1ac] ss:$16 sps:$4 sm:$0xff]  }
  0x4f   : > { %1634 = vmatprep.subr.bf16.mxu1 %v5272_v3  ;;  %v5350_v3 = vld [vmem:[%s7747_s1 + $0x564] ss:$16 sps:$4 sm:$0xff]  }
  0x51   : > { %1592 = vmatpush2.bf16.msra.mxu0 %v5274_v4  ;;  %v5345_v4 = vld [vmem:[%s7747_s1 + $0x1a8] ss:$16 sps:$4 sm:$0xff]  }
  0x52   : > { %1635 = vmatpush2.bf16.msra.mxu1 %v5275_v5  ;;  %1647 = vmatprep.subr.bf16.mxu0 %v5278_v10  ;;  %v5348_v5 = vld [vmem:[%s7747_s1 + $0x560] ss:$16 sps:$4 sm:$0xff]   ;;  %v5359_v10 = vld [vmem:[%s7747_s1 + $0x16c] ss:$16 sps:$4 sm:$0xff]  }
  0x53   : > { %1704 = vmatprep.subr.bf16.mxu1 %v5281_v11  ;;  %v5362_v11 = vld [vmem:[%s7747_s1 + $0x524] ss:$16 sps:$4 sm:$0xff]  }
  0x54   : > { %1594 = vmatmul.mubr.bf16.vlgmr.msra.gmra.mxu0 %v6312_v12 }
  0x55   : > { %1637 = vmatmul.mubr.bf16.vlgmr.msra.gmra.mxu1 %v6314_v13  ;;  %1648 = vmatpush1.bf16.msra.mxu0 %v5276_v14  ;;  %v5357_v14 = vld [vmem:[%s7747_s1 + $0x168] ss:$16 sps:$4 sm:$0xff]  }
  0x56   : > { %1705 = vmatpush1.bf16.msra.mxu1 %v5279_v15  ;;  %1649 = vmatprep.subr.bf16.mxu0 %v5284_v16  ;;  %v5360_v15 = vld [vmem:[%s7747_s1 + $0x520] ss:$16 sps:$4 sm:$0xff]   ;;  %v5365_v16 = vld [vmem:[%s7747_s1 + $0x14c] ss:$16 sps:$4 sm:$0xff]  }
  0x57   : > { %1722 = vmatprep.mubr.bf16.mxu1 %v5992_v21  ;;  %1733 = vmatprep.subr.bf16.mxu1 %v5287_v17  ;;  %v5368_v17 = vld [vmem:[%s7747_s1 + $0x504] ss:$16 sps:$4 sm:$0xff]  }
  0x58   : > { %1679 = vmatprep.mubr.bf16.mxu0 %v6400_v44 }
  0x59   : > { %1650 = vmatpush1.bf16.msra.mxu0 %v5282_v18  ;;  %v5363_v18 = vld [vmem:[%s7747_s1 + $0x148] ss:$16 sps:$4 sm:$0xff]  }
  0x5a   : > { %1651 = vmatprep.subr.bf16.mxu0 %v5290_v22  ;;  %v349_v22 = vld [vmem:[%s6230_s17 + $0x58] sm:$0xff]  ;;  %s5137_s17 = smul.u32 1792, %s6067_s13  ;;  %s5930_s13 = scalar_lea.vmem %s7695_s26, 1792 }
  0x5b   : > { %p5931_p11 = scmp.ne.s32.totalorder %s7695_s26, %s5930_s13  ;;  %p5938_p1 = scmp.lt.s32.totalorder %s5936_s23, %s5930_s13 }
  0x5c   : > { %s7700_s28 = scalar_lea.hbm %s7755_s9, %s5137_s17 }
  0x5d   : > { %4737 = vmatmul.mubr.msk.bf16.vlgmr.msra.gmra.mxu1 %vm1557_vm0, %v6339_v23  ;;  %1652 = vmatpush1.bf16.msra.mxu0 %v5288_v25  ;;  %v5374_v25 = vld [vmem:[%s7747_s1 + $0x2ec] ss:$16 sps:$4 sm:$0xff]   ;;  %p5932_p12 = pnand %p5931_p11, %p6084_p5  ;;  %p5939_p2 = por %p5938_p1, %p5937_p0 }
  0x5e   : > { %1734 = vmatpush1.bf16.msra.mxu1 %v5285_v24  ;;  %1653 = vmatprep.subr.bf16.mxu0 %v5296_v27  ;;  %v5371_v24 = vld [vmem:[%s7747_s1 + $0x12c] ss:$16 sps:$4 sm:$0xff]   ;;  %v5369_v27 = vld [vmem:[%s7747_s1 + $0x128] ss:$16 sps:$4 sm:$0xff]  }
  0x5f   : > { %1735 = vmatprep.subr.bf16.mxu1 %v5293_v26  ;;  %1765 = vmatprep.mubr.bf16.mxu1 %v6251_v53  ;;  %v5329_v53 = vld [vmem:[%s7747_s1 + $0xc] ss:$16 sps:$4 sm:$0xff]   ;;  %v6519_v26 = vpack.c.bf16 %v349_v22, %v342_v20  ;;  %v5453_v20 = vld [vmem:[%s7747_s1 + $0x568] ss:$16 sps:$4 sm:$0xff]   ;;  %p5933_p13 = pneg %p5932_p12 }
  0x60   : > { %v5456_v22 = vld [vmem:[%s7747_s1 + $0x328] ss:$16 sps:$4 sm:$0xff]  }
  0x61   : > { %1654 = vmatpush1.bf16.msra.mxu0 %v5294_v29  ;;  %v5377_v29 = vld [vmem:[%s7747_s1 + $0x10c] ss:$16 sps:$4 sm:$0xff]   ;;  %p5940_p3 = pnand %p5939_p2, %p5933_p13 }
  0x62   : > { %1736 = vmatpush1.bf16.msra.mxu1 %v5291_v28  ;;  %1655 = vmatprep.subr.bf16.mxu0 %v5302_v31  ;;  %v5372_v28 = vld [vmem:[%s7747_s1 + $0x2e8] ss:$16 sps:$4 sm:$0xff]  }
  0x63   : > { %1737 = vmatprep.subr.bf16.mxu1 %v5299_v30  ;;  %v5380_v30 = vld [vmem:[%s7747_s1 + $0x2cc] ss:$16 sps:$4 sm:$0xff]   ;;  %v5375_v31 = vld [vmem:[%s7747_s1 + $0x108] ss:$16 sps:$4 sm:$0xff]  }
  0x65   : > { %1656 = vmatpush1.bf16.msra.mxu0 %v5300_v33  ;;  %v5383_v33 = vld [vmem:[%s7747_s1 + $0x4ec] ss:$16 sps:$4 sm:$0xff]  }
  0x66   : > { %1738 = vmatpush1.bf16.msra.mxu1 %v5297_v32  ;;  %1657 = vmatprep.subr.bf16.mxu0 %v5308_v35  ;;  %v5378_v32 = vld [vmem:[%s7747_s1 + $0x2c8] ss:$16 sps:$4 sm:$0xff]  }
  0x67   : > { %1739 = vmatprep.subr.bf16.mxu1 %v5305_v34  ;;  %v5386_v34 = vld [vmem:[%s7747_s1 + $0x2ac] ss:$16 sps:$4 sm:$0xff]   ;;  %v5381_v35 = vld [vmem:[%s7747_s1 + $0x4e8] ss:$16 sps:$4 sm:$0xff]  }
  0x69   : > { %1658 = vmatpush1.bf16.msra.mxu0 %v5306_v37  ;;  %v5389_v37 = vld [vmem:[%s7747_s1 + $0x4cc] ss:$16 sps:$4 sm:$0xff]  }
  0x6a   : > { %1740 = vmatpush1.bf16.msra.mxu1 %v5303_v36  ;;  %1659 = vmatprep.subr.bf16.mxu0 %v5314_v39  ;;  %v5384_v36 = vld [vmem:[%s7747_s1 + $0x2a8] ss:$16 sps:$4 sm:$0xff]  }
  0x6b   : > { %1741 = vmatprep.subr.bf16.mxu1 %v5311_v38  ;;  %v5392_v38 = vld [vmem:[%s7747_s1 + $0x28c] ss:$16 sps:$4 sm:$0xff]   ;;  %v5387_v39 = vld [vmem:[%s7747_s1 + $0x4c8] ss:$16 sps:$4 sm:$0xff]  }
  0x6d   : > { %1660 = vmatpush1.bf16.msra.mxu0 %v5312_v43  ;;  %v5401_v43 = vld [vmem:[%s7747_s1 + $0x48c] ss:$16 sps:$4 sm:$0xff]  }
  0x6e   : > { %1742 = vmatpush1.bf16.msra.mxu1 %v5309_v40  ;;  %1661 = vmatprep.subr.bf16.mxu0 %v5320_v46  ;;  %v5395_v40 = vld [vmem:[%s7747_s1 + $0x4ac] ss:$16 sps:$4 sm:$0xff]   ;;  %v5399_v46 = vld [vmem:[%s7747_s1 + $0x488] ss:$16 sps:$4 sm:$0xff]  }
  0x6f   : > { %1743 = vmatprep.subr.bf16.mxu1 %v5317_v45  ;;  %v5404_v45 = vld [vmem:[%s7747_s1 + $0x24c] ss:$16 sps:$4 sm:$0xff]  }
  0x71   : > { %1662 = vmatpush1.bf16.msra.mxu0 %v5318_v48  ;;  %v5410_v48 = vld [vmem:[%s7747_s1 + $0x22c] ss:$16 sps:$4 sm:$0xff]  }
  0x72   : > { %1744 = vmatpush1.bf16.msra.mxu1 %v5315_v47  ;;  %1663 = vmatprep.subr.bf16.mxu0 %v5326_v50  ;;  %v5407_v47 = vld [vmem:[%s7747_s1 + $0x46c] ss:$16 sps:$4 sm:$0xff]   ;;  %v5408_v50 = vld [vmem:[%s7747_s1 + $0x228] ss:$16 sps:$4 sm:$0xff]  }
  0x73   : > { %1745 = vmatprep.subr.bf16.mxu1 %v5323_v49  ;;  %v5405_v49 = vld [vmem:[%s7747_s1 + $0x468] ss:$16 sps:$4 sm:$0xff]  }
  0x75   : > { %1664 = vmatpush2.bf16.msra.mxu0 %v5324_v52  ;;  %v5416_v52 = vld [vmem:[%s7747_s1 + $0x20c] ss:$16 sps:$4 sm:$0xff]  }
  0x76   : > { %1746 = vmatpush1.bf16.msra.mxu1 %v5321_v51  ;;  %1665 = vmatprep.subr.bf16.mxu0 %v5332_v55  ;;  %v5413_v51 = vld [vmem:[%s7747_s1 + $0x44c] ss:$16 sps:$4 sm:$0xff]   ;;  %v5414_v55 = vld [vmem:[%s7747_s1 + $0x208] ss:$16 sps:$4 sm:$0xff]  }
  0x77   : > { %1747 = vmatprep.subr.bf16.mxu1 %v5329_v53  ;;  %v5411_v53 = vld [vmem:[%s7747_s1 + $0x448] ss:$16 sps:$4 sm:$0xff]  }
  0x79   : > { %1666 = vmatpush2.bf16.msra.mxu0 %v5330_v57  ;;  %v5422_v57 = vld [vmem:[%s7747_s1 + $0x3ec] ss:$16 sps:$4 sm:$0xff]  }
  0x7a   : > { %1748 = vmatpush1.bf16.msra.mxu1 %v5327_v56  ;;  %1667 = vmatprep.subr.bf16.mxu0 %v5338_v59  ;;  %v5419_v56 = vld [vmem:[%s7747_s1 + $0x42c] ss:$16 sps:$4 sm:$0xff]   ;;  %v5420_v59 = vld [vmem:[%s7747_s1 + $0x3e8] ss:$16 sps:$4 sm:$0xff]  }
  0x7b   : > { %1749 = vmatprep.subr.bf16.mxu1 %v5335_v58  ;;  %v5417_v58 = vld [vmem:[%s7747_s1 + $0x428] ss:$16 sps:$4 sm:$0xff]  }
  0x7d   : > { %1668 = vmatpush2.bf16.msra.mxu0 %v5336_v61  ;;  %v5428_v61 = vld [vmem:[%s7747_s1 + $0x3cc] ss:$16 sps:$4 sm:$0xff]  }
  0x7e   : > { %1750 = vmatpush2.bf16.msra.mxu1 %v5333_v60  ;;  %1669 = vmatprep.subr.bf16.mxu0 %v5344_v63  ;;  %v5425_v60 = vld [vmem:[%s7747_s1 + $0x40c] ss:$16 sps:$4 sm:$0xff]   ;;  %v5426_v63 = vld [vmem:[%s7747_s1 + $0x3c8] ss:$16 sps:$4 sm:$0xff]  }
  0x7f   : > { %1751 = vmatprep.subr.bf16.mxu1 %v5341_v62  ;;  %v5423_v62 = vld [vmem:[%s7747_s1 + $0x408] ss:$16 sps:$4 sm:$0xff]  }
  0x81   : > { %1670 = vmatpush2.bf16.msra.mxu0 %v5342_v1  ;;  %v5434_v1 = vld [vmem:[%s7747_s1 + $0x3ac] ss:$16 sps:$4 sm:$0xff]  }
  0x82   : > { %1752 = vmatpush2.bf16.msra.mxu1 %v5339_v0  ;;  %1671 = vmatprep.subr.bf16.mxu0 %v5350_v3  ;;  %v5431_v0 = vld [vmem:[%s7747_s1 + $0x5ec] ss:$16 sps:$4 sm:$0xff]   ;;  %v5432_v3 = vld [vmem:[%s7747_s1 + $0x3a8] ss:$16 sps:$4 sm:$0xff]  }
  0x83   : > { %1753 = vmatprep.subr.bf16.mxu1 %v5347_v2  ;;  %v5429_v2 = vld [vmem:[%s7747_s1 + $0x5e8] ss:$16 sps:$4 sm:$0xff]  }
  0x85   : > { %1672 = vmatpush2.bf16.msra.mxu0 %v5348_v5  ;;  %v5440_v5 = vld [vmem:[%s7747_s1 + $0x38c] ss:$16 sps:$4 sm:$0xff]  }
  0x86   : > { %1754 = vmatpush2.bf16.msra.mxu1 %v5345_v4  ;;  %1673 = vmatprep.subr.bf16.mxu0 %v5356_v7  ;;  %v5437_v4 = vld [vmem:[%s7747_s1 + $0x5cc] ss:$16 sps:$4 sm:$0xff]   ;;  %v5438_v7 = vld [vmem:[%s7747_s1 + $0x388] ss:$16 sps:$4 sm:$0xff]  }
  0x87   : > { %1755 = vmatprep.subr.bf16.mxu1 %v5353_v6  ;;  %v5435_v6 = vld [vmem:[%s7747_s1 + $0x5c8] ss:$16 sps:$4 sm:$0xff]  }
  0x89   : > { %1674 = vmatpush2.bf16.msra.mxu0 %v5354_v9  ;;  %v5446_v9 = vld [vmem:[%s7747_s1 + $0x36c] ss:$16 sps:$4 sm:$0xff]  }
  0x8a   : > { %1756 = vmatpush2.bf16.msra.mxu1 %v5351_v8  ;;  %1675 = vmatprep.subr.bf16.mxu0 %v5362_v11  ;;  %v5443_v8 = vld [vmem:[%s7747_s1 + $0x5ac] ss:$16 sps:$4 sm:$0xff]   ;;  %v5444_v11 = vld [vmem:[%s7747_s1 + $0x368] ss:$16 sps:$4 sm:$0xff]  }
  0x8b   : > { %1757 = vmatprep.subr.bf16.mxu1 %v5359_v10  ;;  %v5441_v10 = vld [vmem:[%s7747_s1 + $0x5a8] ss:$16 sps:$4 sm:$0xff]  }
  0x8d   : > { %1676 = vmatpush2.bf16.msra.mxu0 %v5360_v15  ;;  %v5452_v15 = vld [vmem:[%s7747_s1 + $0x34c] ss:$16 sps:$4 sm:$0xff]  }
  0x8e   : > { %1758 = vmatpush2.bf16.msra.mxu1 %v5357_v14  ;;  %1677 = vmatprep.subr.bf16.mxu0 %v5368_v17  ;;  %v5449_v14 = vld [vmem:[%s7747_s1 + $0x58c] ss:$16 sps:$4 sm:$0xff]   ;;  %v5450_v17 = vld [vmem:[%s7747_s1 + $0x348] ss:$16 sps:$4 sm:$0xff]  }
  0x8f   : > { %1759 = vmatprep.subr.bf16.mxu1 %v5365_v16  ;;  %v5447_v16 = vld [vmem:[%s7747_s1 + $0x588] ss:$16 sps:$4 sm:$0xff]  }
  0x91   : > { %1678 = vmatpush2.bf16.msra.mxu0 %v5366_v19  ;;  %v5458_v19 = vld [vmem:[%s7747_s1 + $0x32c] ss:$16 sps:$4 sm:$0xff]  }
  0x92   : > { %1760 = vmatpush2.bf16.msra.mxu1 %v5363_v18  ;;  %1776 = vmatprep.subr.bf16.mxu0 %v5374_v25  ;;  %v5455_v18 = vld [vmem:[%s7747_s1 + $0x56c] ss:$16 sps:$4 sm:$0xff]  }
  0x93   : > { %1761 = vmatprep.subr.bf16.mxu1 %v5371_v24  ;;  %v5461_v24 = vld [vmem:[%s7747_s1 + $0x54c] ss:$16 sps:$4 sm:$0xff]  }
  0x94   : > { %1680 = vmatmul.mubr.bf16.vlgmr.msra.gmra.mxu0 %v6519_v26  ;;  %v5464_v25 = vld [vmem:[%s7747_s1 + $0x30c] ss:$16 sps:$4 sm:$0xff]  }
  0x95   : > { %1777 = vmatpush1.bf16.msra.mxu0 %v5372_v28  ;;  %1808 = vmatprep.mubr.bf16.mxu0 %v6253_v54  ;;  %v5390_v54 = vld [vmem:[%s7747_s1 + $0x288] ss:$16 sps:$4 sm:$0xff]  }
  0x96   : > { %1762 = vmatpush2.bf16.msra.mxu1 %v5369_v27  ;;  %1778 = vmatprep.subr.bf16.mxu0 %v5380_v30  ;;  %v5459_v27 = vld [vmem:[%s7747_s1 + $0x548] ss:$16 sps:$4 sm:$0xff]   ;;  %v5470_v30 = vld [vmem:[%s7747_s1 + $0x60c] ss:$16 sps:$4 sm:$0xff]  }
  0x97   : > { %1763 = vmatprep.subr.bf16.mxu1 %v5377_v29  ;;  %v5462_v28 = vld [vmem:[%s7747_s1 + $0x308] ss:$16 sps:$4 sm:$0xff]   ;;  %v5467_v29 = vld [vmem:[%s7747_s1 + $0x52c] ss:$16 sps:$4 sm:$0xff]  }
  0x99   : > { %1779 = vmatpush1.bf16.msra.mxu0 %v5378_v32  ;;  %v5468_v32 = vld [vmem:[%s7747_s1 + $0x608] ss:$16 sps:$4 sm:$0xff]  }
  0x9a   : > { %1764 = vmatpush2.bf16.msra.mxu1 %v5375_v31  ;;  %1780 = vmatprep.subr.bf16.mxu0 %v5386_v34  ;;  %v5465_v31 = vld [vmem:[%s7747_s1 + $0x528] ss:$16 sps:$4 sm:$0xff]  }
  0x9b   : > { %1819 = vmatprep.subr.bf16.mxu1 %v5383_v33  ;;  %v5473_v33 = vld [vmem:[%s7747_s1 + $0x50c] ss:$16 sps:$4 sm:$0xff]  }
  0x9c   : > { %v5474_v34 = vld [vmem:[%s7749_s3 + $0x78] sm:$0xff]  }
  0x9d   : > { %1766 = vmatmul.mubr.bf16.vlgmr.msra.gmra.mxu1 %v6312_v12  ;;  %1781 = vmatpush1.bf16.msra.mxu0 %v5384_v36  ;;  %v5396_v12 = vld [vmem:[%s7747_s1 + $0x268] ss:$16 sps:$4 sm:$0xff]  }
  0x9e   : > { %1820 = vmatpush1.bf16.msra.mxu1 %v5381_v35  ;;  %1782 = vmatprep.subr.bf16.mxu0 %v5392_v38  ;;  %v5471_v35 = vld [vmem:[%s7747_s1 + $0x508] ss:$16 sps:$4 sm:$0xff]  }
  0x9f   : > { %1821 = vmatprep.subr.bf16.mxu1 %v5389_v37  ;;  %1851 = vmatprep.mubr.bf16.mxu1 %v6400_v44  ;;  %v5402_v44 = vld [vmem:[%s7747_s1 + $0x248] ss:$16 sps:$4 sm:$0xff]   ;;  %v5476_v37 = vld [vmem:[%s7749_s3 + $0x70] sm:$0xff]  }
  0xa0   : > { %v5475_v36 = vld [vmem:[%s7749_s3 + $0x38] sm:$0xff]   ;;  %v5478_v38 = vld [vmem:[%s7749_s3 + $0x68] sm:$0xff]  }
  0xa1   : > { %1783 = vmatpush1.bf16.msra.mxu0 %v5390_v54  ;;  %v5480_v54 = vld [vmem:[%s7749_s3 + $0x60] sm:$0xff]  }
  0xa2   : > { %1822 = vmatpush1.bf16.msra.mxu1 %v5387_v39  ;;  %1784 = vmatprep.subr.bf16.mxu0 %v5398_v41  ;;  %v5479_v39 = vld [vmem:[%s7749_s3 + $0x28] sm:$0xff]   ;;  %v5492_v41 = vld [vmem:[%s7749_s3 + $0xf0] sm:$0xff]  }
  0xa3   : > { %1823 = vmatprep.subr.bf16.mxu1 %v5395_v40  ;;  %v5491_v40 = vld [vmem:[%s7749_s3 + $0xb8] sm:$0xff]  }
  0xa5   : > { %1785 = vmatpush1.bf16.msra.mxu0 %v5396_v12  ;;  %v5493_v12 = vld [vmem:[%s7749_s3 + $0xb0] sm:$0xff]  }
  0xa6   : > { %1824 = vmatpush1.bf16.msra.mxu1 %v5393_v42  ;;  %1786 = vmatprep.subr.bf16.mxu0 %v5404_v45  ;;  %v5482_v42 = vld [vmem:[%s7749_s3 + $0x58] sm:$0xff]  }
  0xa7   : > { %1825 = vmatprep.subr.bf16.mxu1 %v5401_v43  ;;  %v5494_v43 = vld [vmem:[%s7749_s3 + $0xe8] sm:$0xff]   ;;  %v5483_v45 = vld [vmem:[%s7749_s3 + $0x18] sm:$0xff]  }
  0xa9   : > { %1787 = vmatpush1.bf16.msra.mxu0 %v5402_v44  ;;  %v5485_v44 = vld [vmem:[%s7749_s3 + $0x10] sm:$0xff]  }
  0xaa   : > { %1826 = vmatpush1.bf16.msra.mxu1 %v5399_v46  ;;  %1788 = vmatprep.subr.bf16.mxu0 %v5410_v48  ;;  %v5484_v46 = vld [vmem:[%s7749_s3 + $0x50] sm:$0xff]   ;;  %v5487_v48 = vld [vmem:[%s7749_s3 + $0x8] sm:$0xff]  }
  0xab   : > { %1827 = vmatprep.subr.bf16.mxu1 %v5407_v47  ;;  %v5486_v47 = vld [vmem:[%s7749_s3 + $0x48] sm:$0xff]  }
  0xad   : > { %1789 = vmatpush1.bf16.msra.mxu0 %v5408_v50  ;;  %v5489_v50 = vld [vmem:[%s7749_s3] sm:$0xff]  }
  0xae   : > { %1828 = vmatpush1.bf16.msra.mxu1 %v5405_v49  ;;  %1790 = vmatprep.subr.bf16.mxu0 %v5416_v52  ;;  %v5488_v49 = vld [vmem:[%s7749_s3 + $0x40] sm:$0xff]  }
  0xaf   : > { %1829 = vmatprep.subr.bf16.mxu1 %v5413_v51  ;;  %v5495_v51 = vld [vmem:[%s7749_s3 + $0xa8] sm:$0xff]   ;;  %v5496_v52 = vld [vmem:[%s7749_s3 + $0xe0] sm:$0xff]  }
  0xb1   : > { %1791 = vmatpush1.bf16.msra.mxu0 %v5414_v55  ;;  %v5498_v55 = vld [vmem:[%s7749_s3 + $0xd8] sm:$0xff]  }
  0xb2   : > { %1830 = vmatpush1.bf16.msra.mxu1 %v5411_v53  ;;  %1792 = vmatprep.subr.bf16.mxu0 %v5422_v57  ;;  %v5497_v53 = vld [vmem:[%s7749_s3 + $0xa0] sm:$0xff]   ;;  %v5500_v57 = vld [vmem:[%s7749_s3 + $0xd0] sm:$0xff]  }
  0xb3   : > { %1831 = vmatprep.subr.bf16.mxu1 %v5419_v56  ;;  %v5499_v56 = vld [vmem:[%s7749_s3 + $0x98] sm:$0xff]  }
  0xb5   : > { %1793 = vmatpush2.bf16.msra.mxu0 %v5420_v59  ;;  %v5502_v59 = vld [vmem:[%s7749_s3 + $0xc8] sm:$0xff]  }
  0xb6   : > { %1832 = vmatpush1.bf16.msra.mxu1 %v5417_v58  ;;  %1794 = vmatprep.subr.bf16.mxu0 %v5428_v61  ;;  %v5501_v58 = vld [vmem:[%s7749_s3 + $0x90] sm:$0xff]   ;;  %v5504_v61 = vld [vmem:[%s7749_s3 + $0xc0] sm:$0xff]  }
  0xb7   : > { %1833 = vmatprep.subr.bf16.mxu1 %v5425_v60  ;;  %v5503_v60 = vld [vmem:[%s7749_s3 + $0x88] sm:$0xff]  }
  0xb9   : > { %1795 = vmatpush2.bf16.msra.mxu0 %v5426_v63 }
  0xba   : > { %1834 = vmatpush1.bf16.msra.mxu1 %v5423_v62  ;;  %1796 = vmatprep.subr.bf16.mxu0 %v5434_v1  ;;  %v5505_v62 = vld [vmem:[%s7749_s3 + $0x80] sm:$0xff]  }
  0xbb   : > { %1835 = vmatprep.subr.bf16.mxu1 %v5431_v0  ;;  %v557_v0 = vlaneseq }
  0xbd   : > { %1797 = vmatpush2.bf16.msra.mxu0 %v5432_v3 }
  0xbe   : > { %1836 = vmatpush2.bf16.msra.mxu1 %v5429_v2  ;;  %1798 = vmatprep.subr.bf16.mxu0 %v5440_v5  ;;  %v6830_v2 = vshrl.u32 %v557_v0, 7 }
  0xbf   : > { %1837 = vmatprep.subr.bf16.mxu1 %v5437_v4 }
  0xc0   : > { %v6833_v5 = vsub.s32 1, %v6830_v2 }
  0xc1   : > { %1799 = vmatpush2.bf16.msra.mxu0 %v5438_v7 }
  0xc2   : > { %1838 = vmatpush2.bf16.msra.mxu1 %v5435_v6  ;;  %1800 = vmatprep.subr.bf16.mxu0 %v5446_v9  ;;  %v6836_v6 = vsub.s32 0, %v6830_v2 }
  0xc3   : > { %1839 = vmatprep.subr.bf16.mxu1 %v5443_v8  ;;  %v555_v8 = vld [vmem:[%s7748_s2] sm:$0xf] }
  0xc5   : > { %1801 = vmatpush2.bf16.msra.mxu0 %v5444_v11  ;;  %v560_v11 = vrot.slane %v555_v8, %v6836_v6 }
  0xc6   : > { %1840 = vmatpush2.bf16.msra.mxu1 %v5441_v10  ;;  %1802 = vmatprep.subr.bf16.mxu0 %v5452_v15  ;;  %v564_v10 = vrot.slane %v555_v8, %v6833_v5 }
  0xc7   : > { %1841 = vmatprep.subr.bf16.mxu1 %v5449_v14 }
  0xc9   : > { %1803 = vmatpush2.bf16.msra.mxu0 %v5450_v17 }
  0xca   : > { %1842 = vmatpush2.bf16.msra.mxu1 %v5447_v16  ;;  %1804 = vmatprep.subr.bf16.mxu0 %v5458_v19 }
  0xcb   : > { %1843 = vmatprep.subr.bf16.mxu1 %v5455_v18 }
  0xcd   : > { %1805 = vmatpush2.bf16.msra.mxu0 %v5456_v22 }
  0xce   : > { %1844 = vmatpush2.bf16.msra.mxu1 %v5453_v20  ;;  %1806 = vmatprep.subr.bf16.mxu0 %v5464_v25 }
  0xcf   : > { %1845 = vmatprep.subr.bf16.mxu1 %v5461_v24 }
  0xd1   : > { %1807 = vmatpush2.bf16.msra.mxu0 %v5462_v28 }
  0xd2   : > { %1846 = vmatpush2.bf16.msra.mxu1 %v5459_v27  ;;  %1876 = vmatprep.subr.bf16.mxu0 %v5470_v30 }
  0xd3   : > { %1847 = vmatprep.subr.bf16.mxu1 %v5467_v29 }
  0xd4   : > { %1809 = vmatmul.mubr.bf16.vlgmr.msra.gmra.mxu0 %v6314_v13  ;;  %v5477_v13 = vld [vmem:[%s7749_s3 + $0x30] sm:$0xff]  }
  0xd5   : > { %1877 = vmatpush1.bf16.msra.mxu0 %v5468_v32  ;;  %1894 = vmatprep.mubr.bf16.mxu0 %v5992_v21 }
  0xd6   : > { %1848 = vmatpush2.bf16.msra.mxu1 %v5465_v31  ;;  %5047 = vmatprep.subr.bf16.mxu0 %v5474_v34 }
  0xd7   : > { %1849 = vmatprep.subr.bf16.mxu1 %v5473_v33 }
  0xda   : > { %1850 = vmatpush2.bf16.msra.mxu1 %v5471_v35 }
  0xdc   : > { %4738 = vmatmul.mubr.msk.bf16.vlgmr.msra.gmra.mxu0 %vm1557_vm0, %v6339_v23  ;;  %v5481_v23 = vld [vmem:[%s7749_s3 + $0x20] sm:$0xff]  }
  0xdd   : > { %1852 = vmatmul.mubr.bf16.vlgmr.msra.gmra.mxu1 %v6519_v26  ;;  %5048 = vmatpush3.bf16.msra.mxu0 %v5475_v36  ;;  %v5490_v26 = vld [vmem:[%s7749_s3 + $0xf8] sm:$0xff]  }
  0xde   : > { %5049 = vmatprep.subr.bf16.mxu0 %v5476_v37  ;;  %5069 = vmatprep.subr.bf16.mxu1 %v5490_v26 }
  0xdf   : > { %5070 = vmatpush3.bf16.msra.mxu1 %v5491_v40 }
  0xe0   : > { %5071 = vmatprep.subr.bf16.mxu1 %v5492_v41 }
  0xe1   : > { %5050 = vmatpush3.bf16.msra.mxu0 %v5477_v13 }
  0xe2   : > { %5051 = vmatprep.subr.bf16.mxu0 %v5478_v38 }
  0xe3   : > { %5072 = vmatpush3.bf16.msra.mxu1 %v5493_v12 }
  0xe4   : > { %5073 = vmatprep.subr.bf16.mxu1 %v5494_v43 }
  0xe5   : > { %5052 = vmatpush3.bf16.msra.mxu0 %v5479_v39 }
  0xe6   : > { %5053 = vmatprep.subr.bf16.mxu0 %v5480_v54 }
  0xe7   : > { %5074 = vmatpush3.bf16.msra.mxu1 %v5495_v51 }
  0xe8   : > { %5075 = vmatprep.subr.bf16.mxu1 %v5496_v52 }
  0xe9   : > { %5054 = vmatpush3.bf16.msra.mxu0 %v5481_v23 }
  0xea   : > { %5055 = vmatprep.subr.bf16.mxu0 %v5482_v42 }
  0xeb   : > { %5076 = vmatpush3.bf16.msra.mxu1 %v5497_v53 }
  0xec   : > { %5077 = vmatprep.subr.bf16.mxu1 %v5498_v55 }
  0xed   : > { %5056 = vmatpush3.bf16.msra.mxu0 %v5483_v45 }
  0xee   : > { %5057 = vmatprep.subr.bf16.mxu0 %v5484_v46 }
  0xef   : > { %5078 = vmatpush3.bf16.msra.mxu1 %v5499_v56 }
  0xf0   : > { %5079 = vmatprep.subr.bf16.mxu1 %v5500_v57 }
  0xf1   : > { %5058 = vmatpush3.bf16.msra.mxu0 %v5485_v44  ;;  %v6845_v44 = vsub.s32 3, %v6830_v2 }
  0xf2   : > { %5059 = vmatprep.subr.bf16.mxu0 %v5486_v47  ;;  %v6848_v47 = vsub.s32 2, %v6830_v2 }
  0xf3   : > { %5080 = vmatpush3.bf16.msra.mxu1 %v5501_v58  ;;  %v572_v51 = vrot.slane %v555_v8, %v6845_v44 }
  0xf4   : > { %5081 = vmatprep.subr.bf16.mxu1 %v5502_v59  ;;  %v568_v52 = vrot.slane %v555_v8, %v6848_v47 }
  0xf5   : > { %5060 = vmatpush3.bf16.msra.mxu0 %v5487_v48 }
  0xf6   : > { %5061 = vmatprep.subr.bf16.mxu0 %v5488_v49 }
  0xf7   : > { %5082 = vmatpush3.bf16.msra.mxu1 %v5503_v60 }
  0xf8   : > { %5083 = vmatprep.subr.bf16.mxu1 %v5504_v61 }
  0xf9   : > { %5062 = vmatpush3.bf16.msra.mxu0 %v5489_v50 }
  0xfb   : > { %5084 = vmatpush3.bf16.msra.mxu1 %v5505_v62 }
 0x114   : > { %v1595_v3 = vpop.f32.mrf.mxu0 }
 0x115   : > { %v1638_v63 = vpop.f32.mrf.mxu1  ;;  %v1596_v17 = vadd.f32 %v1595_v3, %v560_v11 }
 0x116   : > { %v1597_v7 = vpop.f32.mrf.mxu0 }
 0x117   : > { %v1640_v1 = vpop.f32.mrf.mxu1  ;;  %v1598_v16 = vadd.f32 %v1597_v7, %v564_v10  ;;  %v1639_v27 = vadd.f32 %v1638_v63, %v1596_v17 }
 0x118   : > { %v1599_v14 = vpop.f32.mrf.mxu0 }
 0x119   : > { %v1642_v4 = vpop.f32.mrf.mxu1  ;;  %v1600_v19 = vadd.f32 %v1599_v14, %v560_v11  ;;  %v1641_v24 = vadd.f32 %v1640_v1, %v1598_v16 }
 0x11a   : > { %v1601_v18 = vpop.f32.mrf.mxu0 }
 0x11b   : > { %v1644_v9 = vpop.f32.mrf.mxu1  ;;  %v1602_v25 = vadd.f32 %v1601_v18, %v564_v10  ;;  %v1643_v29 = vadd.f32 %v1642_v4, %v1600_v19 }
 0x11d   : > { %v1724_v15 = vpop.f32.mrf.mxu1  ;;  %v1645_v34 = vadd.f32 %v1644_v9, %v1602_v25 }
 0x11f   : > { %v1726_v20 = vpop.f32.mrf.mxu1 }
 0x121   : > { %v1728_v31 = vpop.f32.mrf.mxu1 }
 0x123   : > { %v1730_v39 = vpop.f32.mrf.mxu1 }
 0x154   : > { %v1681_v22 = vpop.f32.mrf.mxu0 }
 0x155   : > { %v1682_v32 = vadd.f32 %v1681_v22, %v1639_v27 }
 0x156   : > { %v1683_v28 = vpop.f32.mrf.mxu0 }
 0x157   : > { %v1684_v30 = vadd.f32 %v1683_v28, %v1641_v24  ;;  %v1725_v54 = vadd.f32 %v1724_v15, %v1682_v32  ;;  %v5508_v32 = vld [vmem:[%s7751_s5 + $0xe4] ss:$16 sps:$4 sm:$0xff]  }
 0x158   : > { %v1685_v33 = vpop.f32.mrf.mxu0  ;;  %2477 = vmatprep.subr.bf16.mxu0 %v5508_v32  ;;  %v5566_v32 = vld [vmem:[%s7753_s7 + $0x118] ss:$28 sps:$4 sm:$0xff]  }
 0x159   : > { %v1686_v35 = vadd.f32 %v1685_v33, %v1643_v29  ;;  %v1727_v37 = vadd.f32 %v1726_v20, %v1684_v30  ;;  %v1905_v42 = vmax.f32 %v1725_v54, 0.0  ;;  %v5509_v33 = vld [vmem:[%s7751_s5 + $0xe8] ss:$16 sps:$4 sm:$0xff]  }
 0x15a   : > { %v1687_v36 = vpop.f32.mrf.mxu0  ;;  %v5521_v54 = vld [vmem:[%s7751_s5 + $0xa8] ss:$16 sps:$4 sm:$0xff]  }
 0x15b   : > { %v1729_v13 = vadd.f32 %v1728_v31, %v1686_v35  ;;  %v1688_v38 = vadd.f32 %v1687_v36, %v1645_v34  ;;  %v1906_v40 = vmax.f32 %v1727_v37, 0.0  ;;  %v5506_v31 = vld [vmem:[%s7751_s5 + $0xe0] ss:$16 sps:$4 sm:$0xff]   ;;  %v5511_v34 = vld [vmem:[%s7751_s5 + $0xec] ss:$16 sps:$4 sm:$0xff]  }
 0x15c   : > { %v5514_v35 = vld [vmem:[%s7751_s5 + $0xc4] ss:$16 sps:$4 sm:$0xff]   ;;  %v5517_v36 = vld [vmem:[%s7751_s5 + $0xcc] ss:$16 sps:$4 sm:$0xff]   ;;  %2520 = vmatprep.subr.bf16.mxu1 %v5511_v34  ;;  %v5512_v37 = vld [vmem:[%s7751_s5 + $0xc0] ss:$16 sps:$4 sm:$0xff]  }
 0x15d   : > { %v1731_v23 = vadd.f32 %v1730_v39, %v1688_v38  ;;  %v1909_v26 = vmax.f32 %v1729_v13, 0.0  ;;  %v1767_v45 = vpop.f32.mrf.mxu1  ;;  %v5520_v13 = vld [vmem:[%s7751_s5 + $0xa4] ss:$16 sps:$4 sm:$0xff]   ;;  %v5523_v38 = vld [vmem:[%s7751_s5 + $0xac] ss:$16 sps:$4 sm:$0xff]  }
 0x15e   : > { %v1768_v58 = vadd.f32 %v1767_v45, %v568_v52  ;;  %v5518_v39 = vld [vmem:[%s7751_s5 + $0xa0] ss:$16 sps:$4 sm:$0xff]   ;;  %v5533_v45 = vld [vmem:[%s7751_s5 + $0x68] ss:$16 sps:$4 sm:$0xff]  }
 0x15f   : > { %v1910_v41 = vmax.f32 %v1731_v23, 0.0  ;;  %v1913_v43 = vpack.c.bf16 %v1909_v26, %v1905_v42  ;;  %v1769_v46 = vpop.f32.mrf.mxu1  ;;  %v5526_v23 = vld [vmem:[%s7751_s5 + $0x84] ss:$16 sps:$4 sm:$0xff]   ;;  %v5529_v26 = vld [vmem:[%s7751_s5 + $0x8c] ss:$16 sps:$4 sm:$0xff]  }
 0x160   : > { %v1770_v57 = vadd.f32 %v1769_v46, %v572_v51  ;;  %v5532_v42 = vld [vmem:[%s7751_s5 + $0x64] ss:$16 sps:$4 sm:$0xff]  }
 0x161   : > { %v1914_v12 = vpack.c.bf16 %v1910_v41, %v1906_v40  ;;  %v1771_v49 = vpop.f32.mrf.mxu1  ;;  %v5524_v40 = vld [vmem:[%s7751_s5 + $0x80] ss:$16 sps:$4 sm:$0xff]   ;;  %v5527_v41 = vld [vmem:[%s7751_s5 + $0x88] ss:$16 sps:$4 sm:$0xff]   ;;  %v5538_v46 = vld [vmem:[%s7751_s5 + $0x44] ss:$16 sps:$4 sm:$0xff]  }
 0x162   : > { %v1772_v61 = vadd.f32 %v1771_v49, %v568_v52  ;;  %v5536_v49 = vld [vmem:[%s7751_s5 + $0x40] ss:$16 sps:$4 sm:$0xff]   ;;  %v5547_v52 = vld [vmem:[%s7751_s5 + $0x2c] ss:$16 sps:$4 sm:$0xff]  }
 0x163   : > { %2212 = vmatprep.mubr.bf16.mxu0 %v1914_v12  ;;  %v1773_v55 = vpop.f32.mrf.mxu1  ;;  %v5535_v12 = vld [vmem:[%s7751_s5 + $0x6c] ss:$16 sps:$4 sm:$0xff]   ;;  %v5574_v34 = vld [vmem:[%s7753_s7 + $0xe4] ss:$28 sps:$4 sm:$0xff]  }
 0x164   : > { %2213 = vmatmul.mubr.bf16.vlgmr.msra.gmra.mxu0 %v1913_v43  ;;  %v1774_v3 = vadd.f32 %v1773_v55, %v572_v51  ;;  %v5530_v43 = vld [vmem:[%s7751_s5 + $0x60] ss:$16 sps:$4 sm:$0xff]   ;;  %v5544_v51 = vld [vmem:[%s7751_s5 + $0x24] ss:$16 sps:$4 sm:$0xff]   ;;  %v5545_v55 = vld [vmem:[%s7751_s5 + $0x28] ss:$16 sps:$4 sm:$0xff]  }
 0x165   : > { %2509 = vmatprep.mubr.bf16.mxu0 %v5992_v21  ;;  %2478 = vmatpush1.bf16.msra.mxu0 %v5506_v31  ;;  %v5571_v31 = vld [vmem:[%s7753_s7 + $0x49c] ss:$28 sps:$4 sm:$0xff]  }
 0x166   : > { %2479 = vmatprep.subr.bf16.mxu0 %v5514_v35  ;;  %v5577_v35 = vld [vmem:[%s7753_s7 + $0x464] ss:$28 sps:$4 sm:$0xff]  }
 0x169   : > { %2480 = vmatpush1.bf16.msra.mxu0 %v5512_v37  ;;  %v5575_v37 = vld [vmem:[%s7753_s7 + $0x460] ss:$28 sps:$4 sm:$0xff]  }
 0x16a   : > { %2481 = vmatprep.subr.bf16.mxu0 %v5520_v13  ;;  %v5583_v13 = vld [vmem:[%s7753_s7 + $0x42c] ss:$28 sps:$4 sm:$0xff]  }
 0x16d   : > { %2482 = vmatpush1.bf16.msra.mxu0 %v5518_v39  ;;  %v5581_v39 = vld [vmem:[%s7753_s7 + $0x428] ss:$28 sps:$4 sm:$0xff]  }
 0x16e   : > { %2483 = vmatprep.subr.bf16.mxu0 %v5526_v23  ;;  %v5589_v23 = vld [vmem:[%s7753_s7 + $0x3f4] ss:$28 sps:$4 sm:$0xff]  }
 0x171   : > { %2484 = vmatpush1.bf16.msra.mxu0 %v5524_v40  ;;  %v5587_v40 = vld [vmem:[%s7753_s7 + $0x3f0] ss:$28 sps:$4 sm:$0xff]  }
 0x172   : > { %2485 = vmatprep.subr.bf16.mxu0 %v5532_v42  ;;  %v5595_v42 = vld [vmem:[%s7753_s7 + $0x3bc] ss:$28 sps:$4 sm:$0xff]  }
 0x175   : > { %2486 = vmatpush1.bf16.msra.mxu0 %v5530_v43  ;;  %v5593_v43 = vld [vmem:[%s7753_s7 + $0x3b8] ss:$28 sps:$4 sm:$0xff]  }
 0x176   : > { %2487 = vmatprep.subr.bf16.mxu0 %v5538_v46  ;;  %v5601_v46 = vld [vmem:[%s7753_s7 + $0x384] ss:$28 sps:$4 sm:$0xff]  }
 0x179   : > { %2488 = vmatpush1.bf16.msra.mxu0 %v5536_v49  ;;  %v5599_v49 = vld [vmem:[%s7753_s7 + $0x380] ss:$28 sps:$4 sm:$0xff]  }
 0x17a   : > { %2489 = vmatprep.subr.bf16.mxu0 %v5544_v51  ;;  %v5607_v51 = vld [vmem:[%s7753_s7 + $0x6cc] ss:$28 sps:$4 sm:$0xff]  }
 0x194   : > { %v1810_v48 = vpop.f32.mrf.mxu0 }
 0x195   : > { %v1811_v63 = vadd.f32 %v1810_v48, %v1768_v58  ;;  %v5541_v48 = vld [vmem:[%s7751_s5 + $0x4c] ss:$16 sps:$4 sm:$0xff]   ;;  %v5548_v58 = vld [vmem:[%s7751_s5] ss:$16 sps:$4 sm:$0xff]  }
 0x196   : > { %v1812_v50 = vpop.f32.mrf.mxu0 }
 0x197   : > { %v1813_v62 = vadd.f32 %v1812_v50, %v1770_v57  ;;  %v5539_v50 = vld [vmem:[%s7751_s5 + $0x48] ss:$16 sps:$4 sm:$0xff]   ;;  %v5553_v57 = vld [vmem:[%s7751_s5 + $0xc] ss:$16 sps:$4 sm:$0xff]  }
 0x198   : > { %v1814_v53 = vpop.f32.mrf.mxu0 }
 0x199   : > { %v1815_v4 = vadd.f32 %v1814_v53, %v1772_v61  ;;  %v5542_v53 = vld [vmem:[%s7751_s5 + $0x20] ss:$16 sps:$4 sm:$0xff]   ;;  %v5559_v61 = vld [vmem:[%s7753_s7 + $0x50c] ss:$28 sps:$4 sm:$0xff]  }
 0x19a   : > { %v1816_v56 = vpop.f32.mrf.mxu0  ;;  %2490 = vmatpush1.bf16.msra.mxu0 %v5542_v53  ;;  %v5605_v53 = vld [vmem:[%s7753_s7 + $0x6c8] ss:$28 sps:$4 sm:$0xff]  }
 0x19b   : > { %v1817_v14 = vadd.f32 %v1816_v56, %v1774_v3  ;;  %v5550_v56 = vld [vmem:[%s7751_s5 + $0x4] ss:$16 sps:$4 sm:$0xff]  }
 0x19c   : > { %v1896_v60 = vpop.f32.mrf.mxu0  ;;  %2491 = vmatprep.subr.bf16.mxu0 %v5550_v56  ;;  %v5613_v56 = vld [vmem:[%s7753_s7 + $0x694] ss:$28 sps:$4 sm:$0xff]  }
 0x19d   : > { %v1853_v59 = vpop.f32.mrf.mxu1 }
 0x19e   : > { %v1898_v1 = vpop.f32.mrf.mxu0  ;;  %v1854_v9 = vadd.f32 %v1853_v59, %v1811_v63  ;;  %v5551_v59 = vld [vmem:[%s7751_s5 + $0x8] ss:$16 sps:$4 sm:$0xff]   ;;  %2492 = vmatpush1.bf16.msra.mxu0 %v5548_v58  ;;  %v5611_v58 = vld [vmem:[%s7753_s7 + $0x690] ss:$28 sps:$4 sm:$0xff]  }
 0x19f   : > { %v1855_v0 = vpop.f32.mrf.mxu1 }
 0x1a0   : > { %v1856_v7 = vadd.f32 %v1855_v0, %v1813_v62  ;;  %v1900_v11 = vpop.f32.mrf.mxu0  ;;  %v1897_v20 = vadd.f32 %v1896_v60, %v1854_v9  ;;  %v5556_v60 = vld [vmem:[%s7753_s7 + $0x18c] ss:$28 sps:$4 sm:$0xff]  }
 0x1a1   : > { %v1857_v10 = vpop.f32.mrf.mxu1  ;;  %4020 = vmatprep.subr.bf16.mxu0 %v5556_v60  ;;  %v5619_v60 = vld [vmem:[%s7753_s7 + $0x65c] ss:$28 sps:$4 sm:$0xff]  }
 0x1a2   : > { %v1858_v8 = vadd.f32 %v1857_v10, %v1815_v4  ;;  %v1902_v16 = vpop.f32.mrf.mxu0  ;;  %v1899_v17 = vadd.f32 %v1898_v1, %v1856_v7  ;;  %v1907_v28 = vmax.f32 %v1897_v20, 0.0  ;;  %v4739_v10 = vld [vmem:[%s7750_s4] ss:$0 sm:$0xff]  ;;  %v5554_v20 = vld [vmem:[%s7753_s7 + $0x188] ss:$28 sps:$4 sm:$0xff]  }
 0x1a3   : > { %v1859_v15 = vpop.f32.mrf.mxu1 }
 0x1a4   : > { %v1901_v18 = vadd.f32 %v1900_v11, %v1858_v8  ;;  %v1860_v19 = vadd.f32 %v1859_v15, %v1817_v14  ;;  %v1908_v25 = vmax.f32 %v1899_v17, 0.0 }
 0x1a6   : > { %v1903_v22 = vadd.f32 %v1902_v16, %v1860_v19  ;;  %v1911_v24 = vmax.f32 %v1901_v18, 0.0 }
 0x1a8   : > { %v1912_v27 = vmax.f32 %v1903_v22, 0.0  ;;  %v1915_v30 = vpack.c.bf16 %v1911_v24, %v1907_v28  ;;  %v5557_v22 = vld [vmem:[%s7753_s7 + $0x508] ss:$28 sps:$4 sm:$0xff]   ;;  %v5560_v28 = vld [vmem:[%s7753_s7 + $0x150] ss:$28 sps:$4 sm:$0xff]  }
 0x1aa   : > { %v1916_v29 = vpack.c.bf16 %v1912_v27, %v1908_v25  ;;  %v5562_v25 = vld [vmem:[%s7753_s7 + $0x154] ss:$28 sps:$4 sm:$0xff]  }
 0x1ab   : > { %v5565_v27 = vld [vmem:[%s7753_s7 + $0x4d4] ss:$28 sps:$4 sm:$0xff]  }
 0x1ac   : > { %2253 = vmatprep.mubr.bf16.mxu1 %v1916_v29  ;;  %v5563_v29 = vld [vmem:[%s7753_s7 + $0x4d0] ss:$28 sps:$4 sm:$0xff]  }
 0x1ad   : > { %2254 = vmatmul.mubr.bf16.vlgmr.msra.gmra.mxu1 %v1915_v30  ;;  %v5568_v30 = vld [vmem:[%s7753_s7 + $0x11c] ss:$28 sps:$4 sm:$0xff]  }
 0x1ae   : > { %2552 = vmatprep.mubr.bf16.mxu1 %v5992_v21  ;;  %2521 = vmatpush1.bf16.msra.mxu1 %v5509_v33  ;;  %v5515_v21 = vld [vmem:[%s7751_s5 + $0xc8] ss:$16 sps:$4 sm:$0xff]  }
 0x1af   : > { %2522 = vmatprep.subr.bf16.mxu1 %v5517_v36  ;;  %v5569_v33 = vld [vmem:[%s7753_s7 + $0x498] ss:$28 sps:$4 sm:$0xff]   ;;  %v5572_v36 = vld [vmem:[%s7753_s7 + $0xe0] ss:$28 sps:$4 sm:$0xff]  }
 0x1b2   : > { %2523 = vmatpush1.bf16.msra.mxu1 %v5515_v21  ;;  %v5580_v21 = vld [vmem:[%s7753_s7 + $0xac] ss:$28 sps:$4 sm:$0xff]  }
 0x1b3   : > { %2524 = vmatprep.subr.bf16.mxu1 %v5523_v38  ;;  %v5578_v38 = vld [vmem:[%s7753_s7 + $0xa8] ss:$28 sps:$4 sm:$0xff]  }
 0x1b6   : > { %2525 = vmatpush1.bf16.msra.mxu1 %v5521_v54  ;;  %v5586_v54 = vld [vmem:[%s7753_s7 + $0x74] ss:$28 sps:$4 sm:$0xff]  }
 0x1b7   : > { %2526 = vmatprep.subr.bf16.mxu1 %v5529_v26  ;;  %v5584_v26 = vld [vmem:[%s7753_s7 + $0x70] ss:$28 sps:$4 sm:$0xff]  }
 0x1ba   : > { %2527 = vmatpush1.bf16.msra.mxu1 %v5527_v41  ;;  %v5592_v41 = vld [vmem:[%s7753_s7 + $0x3c] ss:$28 sps:$4 sm:$0xff]  }
 0x1bb   : > { %2528 = vmatprep.subr.bf16.mxu1 %v5535_v12  ;;  %v5590_v12 = vld [vmem:[%s7753_s7 + $0x38] ss:$28 sps:$4 sm:$0xff]  }
 0x1be   : > { %2529 = vmatpush1.bf16.msra.mxu1 %v5533_v45  ;;  %v5598_v45 = vld [vmem:[%s7753_s7 + $0x4] ss:$28 sps:$4 sm:$0xff]  }
 0x1bf   : > { %2530 = vmatprep.subr.bf16.mxu1 %v5541_v48  ;;  %v5596_v48 = vld [vmem:[%s7753_s7] ss:$28 sps:$4 sm:$0xff]  }
 0x1c2   : > { %2531 = vmatpush1.bf16.msra.mxu1 %v5539_v50  ;;  %v5604_v50 = vld [vmem:[%s7753_s7 + $0x34c] ss:$28 sps:$4 sm:$0xff]  }
 0x1c3   : > { %2532 = vmatprep.subr.bf16.mxu1 %v5547_v52  ;;  %v5602_v52 = vld [vmem:[%s7753_s7 + $0x348] ss:$28 sps:$4 sm:$0xff]  }
 0x1c6   : > { %2533 = vmatpush1.bf16.msra.mxu1 %v5545_v55  ;;  %v5610_v55 = vld [vmem:[%s7753_s7 + $0x314] ss:$28 sps:$4 sm:$0xff]  }
 0x1c7   : > { %2534 = vmatprep.subr.bf16.mxu1 %v5553_v57  ;;  %v5608_v57 = vld [vmem:[%s7753_s7 + $0x310] ss:$28 sps:$4 sm:$0xff]  }
 0x1ca   : > { %2535 = vmatpush1.bf16.msra.mxu1 %v5551_v59  ;;  %v5616_v59 = vld [vmem:[%s7753_s7 + $0x2dc] ss:$28 sps:$4 sm:$0xff]  }
 0x1cb   : > { %4063 = vmatprep.subr.bf16.mxu1 %v5559_v61  ;;  %v5614_v61 = vld [vmem:[%s7753_s7 + $0x2d8] ss:$28 sps:$4 sm:$0xff]  }
 0x224   : > { %v5063_v62 = vpop.f32.mrf.mxu0 }
 0x226   : > { %v5064_v63 = vpop.f32.mrf.mxu0 }
 0x227   : > { %v5065_v7 = vadd.f32 %v5064_v63, %v5063_v62  ;;  %v5617_v62 = vld [vmem:[%s7753_s7 + $0x658] ss:$28 sps:$4 sm:$0xff]   ;;  %v5622_v63 = vld [vmem:[%s7753_s7 + $0x2a4] ss:$28 sps:$4 sm:$0xff]  }
 0x228   : > { %v5066_v0 = vpop.f32.mrf.mxu0 }
 0x229   : > { %v2215_v15 = vadd.f32 %v5065_v7, %v4739_v10  ;;  %v5631_v7 = vld [vmem:[%s7753_s7 + $0x5ec] ss:$28 sps:$4 sm:$0xff]  }
 0x22a   : > { %v5067_v1 = vpop.f32.mrf.mxu0 }
 0x22b   : > { %v5068_v9 = vadd.f32 %v5067_v1, %v5066_v0  ;;  %v5625_v0 = vld [vmem:[%s7753_s7 + $0x624] ss:$28 sps:$4 sm:$0xff]  }
 0x22c   : > { %v5620_v1 = vld [vmem:[%s7753_s7 + $0x2a0] ss:$28 sps:$4 sm:$0xff]  }
 0x22d   : > { %v2218_v16 = vadd.f32 %v5068_v9, %v4739_v10  ;;  %v5626_v9 = vld [vmem:[%s7753_s7 + $0x268] ss:$28 sps:$4 sm:$0xff]  }
 0x22e   : > { %v5629_v10 = vld [vmem:[%s7753_s7 + $0x5e8] ss:$28 sps:$4 sm:$0xff]  }
 0x26d   : > { %v5085_v3 = vpop.f32.mrf.mxu1 }
 0x26f   : > { %v5086_v4 = vpop.f32.mrf.mxu1 }
 0x270   : > { %v5087_v14 = vadd.f32 %v5086_v4, %v5085_v3  ;;  %v5623_v3 = vld [vmem:[%s7753_s7 + $0x620] ss:$28 sps:$4 sm:$0xff]   ;;  %v5628_v4 = vld [vmem:[%s7753_s7 + $0x26c] ss:$28 sps:$4 sm:$0xff]  }
 0x271   : > { %v5088_v11 = vpop.f32.mrf.mxu1 }
 0x272   : > { %v2256_v18 = vadd.f32 %v5087_v14, %v2215_v15  ;;  %v5637_v14 = vld [vmem:[%s7753_s7 + $0x5b4] ss:$28 sps:$4 sm:$0xff]  }
 0x273   : > { %v5089_v8 = vpop.f32.mrf.mxu1  ;;  %v5635_v15 = vld [vmem:[%s7753_s7 + $0x5b0] ss:$28 sps:$4 sm:$0xff]  }
 0x274   : > { %v5090_v17 = vadd.f32 %v5089_v8, %v5088_v11  ;;  %v5634_v11 = vld [vmem:[%s7753_s7 + $0x234] ss:$28 sps:$4 sm:$0xff]  }
 0x275   : > { %v5632_v8 = vld [vmem:[%s7753_s7 + $0x230] ss:$28 sps:$4 sm:$0xff]  }
 0x276   : > { %v2259_v19 = vadd.f32 %v5090_v17, %v2218_v16  ;;  %v5640_v16 = vld [vmem:[%s7753_s7 + $0x1fc] ss:$28 sps:$4 sm:$0xff]  }
 0x277   : > { %v5643_v17 = vld [vmem:[%s7753_s7 + $0x57c] ss:$28 sps:$4 sm:$0xff]  }
 0x278   : > { %v2262_v24 = vpack.c.bf16 %v2259_v19, %v2256_v18  ;;  %v5638_v18 = vld [vmem:[%s7753_s7 + $0x1f8] ss:$28 sps:$4 sm:$0xff]  }
 0x279   : > { %v5641_v19 = vld [vmem:[%s7753_s7 + $0x578] ss:$28 sps:$4 sm:$0xff]  }
 0x27a   : > { %2510 = vmatmul.mubr.bf16.vlgmr.msra.gmra.mxu0 %v2262_v24  ;;  %2553 = vmatmul.mubr.bf16.vlgmr.msra.gmra.mxu1 %v2262_v24  ;;  %v5644_v24 = vld [vmem:[%s7753_s7 + $0x1c0] ss:$28 sps:$4 sm:$0xff]  }
 0x27b   : > { %4021 = vmatpush1.bf16.msra.mxu0 %v5554_v20  ;;  %4064 = vmatpush1.bf16.msra.mxu1 %v5557_v22  ;;  %v5646_v20 = vld [vmem:[%s7753_s7 + $0x1c4] ss:$28 sps:$4 sm:$0xff]  }
 0x27c   : > { %4022 = vmatprep.subr.bf16.mxu0 %v5562_v25  ;;  %4065 = vmatprep.subr.bf16.mxu1 %v5565_v27  ;;  %v5649_v22 = vld [vmem:[%s7753_s7 + $0x544] ss:$28 sps:$4 sm:$0xff]   ;;  %v5652_v27 = vld [vmem:[%s7753_s7 + $0x194] ss:$28 sps:$4 sm:$0xff]  }
 0x27d   : > { %v5647_v25 = vld [vmem:[%s7753_s7 + $0x540] ss:$28 sps:$4 sm:$0xff]  }
 0x27f   : > { %4023 = vmatpush1.bf16.msra.mxu0 %v5560_v28  ;;  %4066 = vmatpush1.bf16.msra.mxu1 %v5563_v29  ;;  %v5655_v28 = vld [vmem:[%s7753_s7 + $0x514] ss:$28 sps:$4 sm:$0xff]   ;;  %v2295_v29 = vld [vmem:[%s7752_s6] sm:$0xf] }
 0x280   : > { %4024 = vmatprep.subr.bf16.mxu0 %v5568_v30  ;;  %4067 = vmatprep.subr.bf16.mxu1 %v5571_v31 }
 0x283   : > { %4025 = vmatpush1.bf16.msra.mxu0 %v5566_v32  ;;  %4068 = vmatpush1.bf16.msra.mxu1 %v5569_v33  ;;  %v2304_v32 = vrot.slane %v2295_v29, %v6833_v5  ;;  %v2312_v33 = vrot.slane %v2295_v29, %v6845_v44 }
 0x284   : > { %4026 = vmatprep.subr.bf16.mxu0 %v5574_v34  ;;  %4069 = vmatprep.subr.bf16.mxu1 %v5577_v35  ;;  %v2300_v34 = vrot.slane %v2295_v29, %v6836_v6  ;;  %v2308_v35 = vrot.slane %v2295_v29, %v6848_v47  ;;  %v5694_v29 = vld [vmem:[%s7753_s7 + $0xc] ss:$28 sps:$4 sm:$0xff]  }
 0x287   : > { %4027 = vmatpush1.bf16.msra.mxu0 %v5572_v36  ;;  %4070 = vmatpush1.bf16.msra.mxu1 %v5575_v37 }
 0x288   : > { %4028 = vmatprep.subr.bf16.mxu0 %v5580_v21  ;;  %4071 = vmatprep.subr.bf16.mxu1 %v5583_v13 }
 0x28b   : > { %4029 = vmatpush1.bf16.msra.mxu0 %v5578_v38  ;;  %4072 = vmatpush1.bf16.msra.mxu1 %v5581_v39 }
 0x28c   : > { %4030 = vmatprep.subr.bf16.mxu0 %v5586_v54  ;;  %4073 = vmatprep.subr.bf16.mxu1 %v5589_v23 }
 0x28f   : > { %4031 = vmatpush1.bf16.msra.mxu0 %v5584_v26  ;;  %4074 = vmatpush1.bf16.msra.mxu1 %v5587_v40 }
 0x290   : > { %4032 = vmatprep.subr.bf16.mxu0 %v5592_v41  ;;  %4075 = vmatprep.subr.bf16.mxu1 %v5595_v42 }
 0x293   : > { %4033 = vmatpush1.bf16.msra.mxu0 %v5590_v12  ;;  %4076 = vmatpush1.bf16.msra.mxu1 %v5593_v43 }
 0x294   : > { %4034 = vmatprep.subr.bf16.mxu0 %v5598_v45  ;;  %4077 = vmatprep.subr.bf16.mxu1 %v5601_v46 }
 0x297   : > { %4035 = vmatpush1.bf16.msra.mxu0 %v5596_v48  ;;  %4078 = vmatpush1.bf16.msra.mxu1 %v5599_v49 }
 0x298   : > { %4036 = vmatprep.subr.bf16.mxu0 %v5604_v50  ;;  %4079 = vmatprep.subr.bf16.mxu1 %v5607_v51 }
 0x29b   : > { %4037 = vmatpush2.bf16.msra.mxu0 %v5602_v52  ;;  %4080 = vmatpush2.bf16.msra.mxu1 %v5605_v53 }
 0x29c   : > { %4038 = vmatprep.subr.bf16.mxu0 %v5610_v55  ;;  %4081 = vmatprep.subr.bf16.mxu1 %v5613_v56 }
 0x29f   : > { %4039 = vmatpush2.bf16.msra.mxu0 %v5608_v57  ;;  %4082 = vmatpush2.bf16.msra.mxu1 %v5611_v58  ;;  %v5650_v57 = vld [vmem:[%s7753_s7 + $0x190] ss:$28 sps:$4 sm:$0xff]  }
 0x2a0   : > { %4040 = vmatprep.subr.bf16.mxu0 %v5616_v59  ;;  %4083 = vmatprep.subr.bf16.mxu1 %v5619_v60  ;;  %v5653_v58 = vld [vmem:[%s7753_s7 + $0x510] ss:$28 sps:$4 sm:$0xff]  }
 0x2a3   : > { %4041 = vmatpush2.bf16.msra.mxu0 %v5614_v61  ;;  %4084 = vmatpush2.bf16.msra.mxu1 %v5617_v62  ;;  %v5658_v61 = vld [vmem:[%s7753_s7 + $0x15c] ss:$28 sps:$4 sm:$0xff]  }
 0x2a4   : > { %4042 = vmatprep.subr.bf16.mxu0 %v5622_v63  ;;  %4085 = vmatprep.subr.bf16.mxu1 %v5625_v0  ;;  %v5661_v62 = vld [vmem:[%s7753_s7 + $0x4dc] ss:$28 sps:$4 sm:$0xff]  }
 0x2a5   : > { %v5656_v63 = vld [vmem:[%s7753_s7 + $0x158] ss:$28 sps:$4 sm:$0xff]  }
 0x2a6   : > { %v5659_v0 = vld [vmem:[%s7753_s7 + $0x4d8] ss:$28 sps:$4 sm:$0xff]  }
 0x2a7   : > { %4043 = vmatpush2.bf16.msra.mxu0 %v5620_v1  ;;  %4086 = vmatpush2.bf16.msra.mxu1 %v5623_v3  ;;  %v5664_v1 = vld [vmem:[%s7753_s7 + $0x124] ss:$28 sps:$4 sm:$0xff]  }
 0x2a8   : > { %4044 = vmatprep.subr.bf16.mxu0 %v5628_v4  ;;  %4087 = vmatprep.subr.bf16.mxu1 %v5631_v7  ;;  %v5667_v3 = vld [vmem:[%s7753_s7 + $0x4a4] ss:$28 sps:$4 sm:$0xff]  }
 0x2a9   : > { %v5662_v4 = vld [vmem:[%s7753_s7 + $0x120] ss:$28 sps:$4 sm:$0xff]  }
 0x2aa   : > { %v5665_v7 = vld [vmem:[%s7753_s7 + $0x4a0] ss:$28 sps:$4 sm:$0xff]  }
 0x2ab   : > { %4045 = vmatpush2.bf16.msra.mxu0 %v5626_v9  ;;  %4088 = vmatpush2.bf16.msra.mxu1 %v5629_v10  ;;  %v5670_v9 = vld [vmem:[%s7753_s7 + $0xec] ss:$28 sps:$4 sm:$0xff]  }
 0x2ac   : > { %4046 = vmatprep.subr.bf16.mxu0 %v5634_v11  ;;  %4089 = vmatprep.subr.bf16.mxu1 %v5637_v14  ;;  %v5673_v10 = vld [vmem:[%s7753_s7 + $0x46c] ss:$28 sps:$4 sm:$0xff]  }
 0x2ad   : > { %v5668_v11 = vld [vmem:[%s7753_s7 + $0xe8] ss:$28 sps:$4 sm:$0xff]  }
 0x2ae   : > { %v5671_v14 = vld [vmem:[%s7753_s7 + $0x468] ss:$28 sps:$4 sm:$0xff]  }
 0x2af   : > { %4047 = vmatpush2.bf16.msra.mxu0 %v5632_v8  ;;  %4090 = vmatpush2.bf16.msra.mxu1 %v5635_v15  ;;  %v5676_v8 = vld [vmem:[%s7753_s7 + $0xb4] ss:$28 sps:$4 sm:$0xff]  }
 0x2b0   : > { %4048 = vmatprep.subr.bf16.mxu0 %v5640_v16  ;;  %4091 = vmatprep.subr.bf16.mxu1 %v5643_v17  ;;  %v5679_v15 = vld [vmem:[%s7753_s7 + $0x434] ss:$28 sps:$4 sm:$0xff]  }
 0x2b1   : > { %v5674_v16 = vld [vmem:[%s7753_s7 + $0xb0] ss:$28 sps:$4 sm:$0xff]  }
 0x2b2   : > { %v5677_v17 = vld [vmem:[%s7753_s7 + $0x430] ss:$28 sps:$4 sm:$0xff]  }
 0x2b3   : > { %4049 = vmatpush2.bf16.msra.mxu0 %v5638_v18  ;;  %4092 = vmatpush2.bf16.msra.mxu1 %v5641_v19  ;;  %v5682_v18 = vld [vmem:[%s7753_s7 + $0x7c] ss:$28 sps:$4 sm:$0xff]  }
 0x2b4   : > { %4050 = vmatprep.subr.bf16.mxu0 %v5646_v20  ;;  %4093 = vmatprep.subr.bf16.mxu1 %v5649_v22  ;;  %v5685_v19 = vld [vmem:[%s7753_s7 + $0x3fc] ss:$28 sps:$4 sm:$0xff]  }
 0x2b5   : > { %v5680_v20 = vld [vmem:[%s7753_s7 + $0x78] ss:$28 sps:$4 sm:$0xff]  }
 0x2b6   : > { %v5683_v22 = vld [vmem:[%s7753_s7 + $0x3f8] ss:$28 sps:$4 sm:$0xff]  }
 0x2b7   : > { %4051 = vmatpush2.bf16.msra.mxu0 %v5644_v24  ;;  %4094 = vmatpush2.bf16.msra.mxu1 %v5647_v25  ;;  %v5688_v24 = vld [vmem:[%s7753_s7 + $0x44] ss:$28 sps:$4 sm:$0xff]  }
 0x2b8   : > { %4106 = vmatprep.subr.bf16.mxu0 %v5652_v27  ;;  %4149 = vmatprep.subr.bf16.mxu1 %v5655_v28  ;;  %v5691_v25 = vld [vmem:[%s7753_s7 + $0x3c4] ss:$28 sps:$4 sm:$0xff]  }
 0x2b9   : > { %v5686_v27 = vld [vmem:[%s7753_s7 + $0x40] ss:$28 sps:$4 sm:$0xff]  }
 0x2ba   : > { %v5689_v28 = vld [vmem:[%s7753_s7 + $0x3c0] ss:$28 sps:$4 sm:$0xff]  }
 0x33a   : > { %v2511_v30 = vpop.f32.mrf.mxu0  ;;  %v2554_v31 = vpop.f32.mrf.mxu1 }
 0x33b   : > { %v2512_v26 = vadd.f32 %v2511_v30, %v2300_v34  ;;  %v2555_v40 = vadd.f32 %v2554_v31, %v2308_v35  ;;  %v5697_v30 = vld [vmem:[%s7753_s7 + $0x38c] ss:$28 sps:$4 sm:$0xff]  }
 0x33c   : > { %v2513_v36 = vpop.f32.mrf.mxu0  ;;  %v2556_v37 = vpop.f32.mrf.mxu1  ;;  %v5692_v31 = vld [vmem:[%s7753_s7 + $0x8] ss:$28 sps:$4 sm:$0xff]  }
 0x33d   : > { %v2514_v38 = vadd.f32 %v2513_v36, %v2304_v32  ;;  %v2557_v39 = vadd.f32 %v2556_v37, %v2312_v33  ;;  %v2563_v52 = vmax.f32 %v2512_v26, 0.0  ;;  %v2565_v53 = vmax.f32 %v2555_v40, 0.0  ;;  %v5701_v36 = vld [vmem:[%s7753_s7 + $0x6d0] ss:$28 sps:$4 sm:$0xff]   ;;  %v5706_v37 = vld [vmem:[%s7753_s7 + $0x31c] ss:$28 sps:$4 sm:$0xff]  }
 0x33e   : > { %v2515_v21 = vpop.f32.mrf.mxu0  ;;  %v2558_v13 = vpop.f32.mrf.mxu1  ;;  %v5713_v26 = vld [vmem:[%s7753_s7 + $0x660] ss:$28 sps:$4 sm:$0xff]   ;;  %v5718_v40 = vld [vmem:[%s7753_s7 + $0x2ac] ss:$28 sps:$4 sm:$0xff]  }
 0x33f   : > { %v2516_v54 = vadd.f32 %v2515_v21, %v2300_v34  ;;  %v2559_v23 = vadd.f32 %v2558_v13, %v2308_v35  ;;  %v2564_v48 = vmax.f32 %v2514_v38, 0.0  ;;  %v2566_v49 = vmax.f32 %v2557_v39, 0.0  ;;  %v5703_v34 = vld [vmem:[%s7753_s7 + $0x6d4] ss:$28 sps:$4 sm:$0xff]   ;;  %v5709_v21 = vld [vmem:[%s7753_s7 + $0x69c] ss:$28 sps:$4 sm:$0xff]  }
 0x340   : > { %v2517_v41 = vpop.f32.mrf.mxu0  ;;  %v2560_v42 = vpop.f32.mrf.mxu1  ;;  %v5698_v35 = vld [vmem:[%s7753_s7 + $0x350] ss:$28 sps:$4 sm:$0xff]   ;;  %v5704_v13 = vld [vmem:[%s7753_s7 + $0x318] ss:$28 sps:$4 sm:$0xff]   ;;  %v5712_v39 = vld [vmem:[%s7753_s7 + $0x2e4] ss:$28 sps:$4 sm:$0xff]  }
 0x341   : > { %v2518_v12 = vadd.f32 %v2517_v41, %v2304_v32  ;;  %v2561_v43 = vadd.f32 %v2560_v42, %v2312_v33  ;;  %v2567_v45 = vmax.f32 %v2516_v54, 0.0  ;;  %v2569_v46 = vmax.f32 %v2559_v23, 0.0  ;;  %v5695_v32 = vld [vmem:[%s7753_s7 + $0x388] ss:$28 sps:$4 sm:$0xff]   ;;  %v5700_v33 = vld [vmem:[%s7753_s7 + $0x354] ss:$28 sps:$4 sm:$0xff]  }
 0x342   : > { %v5707_v38 = vld [vmem:[%s7753_s7 + $0x698] ss:$28 sps:$4 sm:$0xff]   ;;  %v5715_v54 = vld [vmem:[%s7753_s7 + $0x664] ss:$28 sps:$4 sm:$0xff]   ;;  %v5721_v41 = vld [vmem:[%s7753_s7 + $0x62c] ss:$28 sps:$4 sm:$0xff]  }
 0x343   : > { %v2568_v50 = vmax.f32 %v2518_v12, 0.0  ;;  %v2570_v51 = vmax.f32 %v2561_v43, 0.0  ;;  %v7167_v59 = vpack.c.bf16 %v2567_v45, %v2563_v52  ;;  %v7169_v60 = vpack.c.bf16 %v2569_v46, %v2565_v53  ;;  %v5710_v23 = vld [vmem:[%s7753_s7 + $0x2e0] ss:$28 sps:$4 sm:$0xff]   ;;  %v5716_v42 = vld [vmem:[%s7753_s7 + $0x2a8] ss:$28 sps:$4 sm:$0xff]  }
 0x344   : > { %v5719_v12 = vld [vmem:[%s7753_s7 + $0x628] ss:$28 sps:$4 sm:$0xff]   ;;  %v5724_v43 = vld [vmem:[%s7753_s7 + $0x274] ss:$28 sps:$4 sm:$0xff]  }
 0x345   : > { %v7157_v55 = vpack.c.bf16 %v2568_v50, %v2564_v48  ;;  %v7159_v56 = vpack.c.bf16 %v2570_v51, %v2566_v49  ;;  %v5727_v45 = vld [vmem:[%s7753_s7 + $0x5f4] ss:$28 sps:$4 sm:$0xff]   ;;  %v5730_v49 = vld [vmem:[%s7753_s7 + $0x23c] ss:$28 sps:$4 sm:$0xff]   ;;  %v5736_v53 = vld [vmem:[%s7753_s7 + $0x204] ss:$28 sps:$4 sm:$0xff]  }
 0x346   : > { %v5722_v46 = vld [vmem:[%s7753_s7 + $0x270] ss:$28 sps:$4 sm:$0xff]   ;;  %v5733_v50 = vld [vmem:[%s7753_s7 + $0x5bc] ss:$28 sps:$4 sm:$0xff]  }
 0x347   : > { %4052 = vmatprep.mubr.bf16.mxu0 %v7157_v55  ;;  %4095 = vmatprep.mubr.bf16.mxu1 %v7159_v56  ;;  %v5725_v48 = vld [vmem:[%s7753_s7 + $0x5f0] ss:$28 sps:$4 sm:$0xff]   ;;  %v5728_v51 = vld [vmem:[%s7753_s7 + $0x238] ss:$28 sps:$4 sm:$0xff]  }
 0x348   : > { %4053 = vmatmul.mubr.bf16.vlgmr.msra.gmra.mxu0 %v7167_v59  ;;  %4096 = vmatmul.mubr.bf16.vlgmr.msra.gmra.mxu1 %v7169_v60  ;;  %v5731_v52 = vld [vmem:[%s7753_s7 + $0x5b8] ss:$28 sps:$4 sm:$0xff]  }
 0x349   : > { %4107 = vmatpush1.bf16.msra.mxu0 %v5650_v57  ;;  %4150 = vmatpush1.bf16.msra.mxu1 %v5653_v58  ;;  %v5739_v57 = vld [vmem:[%s7753_s7 + $0x584] ss:$28 sps:$4 sm:$0xff]  }
 0x34a   : > { %4138 = vmatprep.mubr.bf16.mxu0 %v7157_v55  ;;  %4181 = vmatprep.mubr.bf16.mxu1 %v7159_v56  ;;  %v5734_v58 = vld [vmem:[%s7753_s7 + $0x200] ss:$28 sps:$4 sm:$0xff]  }
 0x34b   : > { %4108 = vmatprep.subr.bf16.mxu0 %v5658_v61  ;;  %4151 = vmatprep.subr.bf16.mxu1 %v5661_v62  ;;  %v5737_v61 = vld [vmem:[%s7753_s7 + $0x580] ss:$28 sps:$4 sm:$0xff]   ;;  %v5742_v62 = vld [vmem:[%s7753_s7 + $0x1cc] ss:$28 sps:$4 sm:$0xff]  }
 0x34d   : > { %4109 = vmatpush1.bf16.msra.mxu0 %v5656_v63  ;;  %4152 = vmatpush1.bf16.msra.mxu1 %v5659_v0  ;;  %v5745_v63 = vld [vmem:[%s7753_s7 + $0x54c] ss:$28 sps:$4 sm:$0xff]  }
 0x34e   : > { %4110 = vmatprep.subr.bf16.mxu0 %v5664_v1  ;;  %4153 = vmatprep.subr.bf16.mxu1 %v5667_v3  ;;  %v5740_v0 = vld [vmem:[%s7753_s7 + $0x1c8] ss:$28 sps:$4 sm:$0xff]   ;;  %v5748_v3 = vld [vmem:[%s7753_s7 + $0x19c] ss:$28 sps:$4 sm:$0xff]  }
 0x34f   : > { %v5743_v1 = vld [vmem:[%s7753_s7 + $0x548] ss:$28 sps:$4 sm:$0xff]  }
 0x351   : > { %4111 = vmatpush1.bf16.msra.mxu0 %v5662_v4  ;;  %4154 = vmatpush1.bf16.msra.mxu1 %v5665_v7  ;;  %v5751_v4 = vld [vmem:[%s7753_s7 + $0x51c] ss:$28 sps:$4 sm:$0xff]  }
 0x352   : > { %4112 = vmatprep.subr.bf16.mxu0 %v5670_v9  ;;  %4155 = vmatprep.subr.bf16.mxu1 %v5673_v10  ;;  %v5746_v7 = vld [vmem:[%s7753_s7 + $0x198] ss:$28 sps:$4 sm:$0xff]   ;;  %v5754_v10 = vld [vmem:[%s7753_s7 + $0x164] ss:$28 sps:$4 sm:$0xff]  }
 0x353   : > { %v5749_v9 = vld [vmem:[%s7753_s7 + $0x518] ss:$28 sps:$4 sm:$0xff]  }
 0x355   : > { %4113 = vmatpush1.bf16.msra.mxu0 %v5668_v11  ;;  %4156 = vmatpush1.bf16.msra.mxu1 %v5671_v14  ;;  %v5757_v11 = vld [vmem:[%s7753_s7 + $0x4e4] ss:$28 sps:$4 sm:$0xff]  }
 0x356   : > { %4114 = vmatprep.subr.bf16.mxu0 %v5676_v8  ;;  %4157 = vmatprep.subr.bf16.mxu1 %v5679_v15  ;;  %v5752_v14 = vld [vmem:[%s7753_s7 + $0x160] ss:$28 sps:$4 sm:$0xff]   ;;  %v5760_v15 = vld [vmem:[%s7753_s7 + $0x12c] ss:$28 sps:$4 sm:$0xff]  }
 0x357   : > { %v5755_v8 = vld [vmem:[%s7753_s7 + $0x4e0] ss:$28 sps:$4 sm:$0xff]  }
 0x359   : > { %4115 = vmatpush1.bf16.msra.mxu0 %v5674_v16  ;;  %4158 = vmatpush1.bf16.msra.mxu1 %v5677_v17  ;;  %v5763_v16 = vld [vmem:[%s7753_s7 + $0x4ac] ss:$28 sps:$4 sm:$0xff]  }
 0x35a   : > { %4116 = vmatprep.subr.bf16.mxu0 %v5682_v18  ;;  %4159 = vmatprep.subr.bf16.mxu1 %v5685_v19  ;;  %v5758_v17 = vld [vmem:[%s7753_s7 + $0x128] ss:$28 sps:$4 sm:$0xff]   ;;  %v5766_v19 = vld [vmem:[%s7753_s7 + $0xf4] ss:$28 sps:$4 sm:$0xff]  }
 0x35b   : > { %v5761_v18 = vld [vmem:[%s7753_s7 + $0x4a8] ss:$28 sps:$4 sm:$0xff]  }
 0x35d   : > { %4117 = vmatpush1.bf16.msra.mxu0 %v5680_v20  ;;  %4160 = vmatpush1.bf16.msra.mxu1 %v5683_v22  ;;  %v5769_v20 = vld [vmem:[%s7753_s7 + $0x474] ss:$28 sps:$4 sm:$0xff]  }
 0x35e   : > { %4118 = vmatprep.subr.bf16.mxu0 %v5688_v24  ;;  %4161 = vmatprep.subr.bf16.mxu1 %v5691_v25  ;;  %v5764_v22 = vld [vmem:[%s7753_s7 + $0xf0] ss:$28 sps:$4 sm:$0xff]   ;;  %v5772_v25 = vld [vmem:[%s7753_s7 + $0xbc] ss:$28 sps:$4 sm:$0xff]  }
 0x35f   : > { %v5767_v24 = vld [vmem:[%s7753_s7 + $0x470] ss:$28 sps:$4 sm:$0xff]  }
 0x361   : > { %4119 = vmatpush1.bf16.msra.mxu0 %v5686_v27  ;;  %4162 = vmatpush1.bf16.msra.mxu1 %v5689_v28  ;;  %v5775_v27 = vld [vmem:[%s7753_s7 + $0x43c] ss:$28 sps:$4 sm:$0xff]  }
 0x362   : > { %4120 = vmatprep.subr.bf16.mxu0 %v5694_v29  ;;  %4163 = vmatprep.subr.bf16.mxu1 %v5697_v30  ;;  %v5770_v28 = vld [vmem:[%s7753_s7 + $0xb8] ss:$28 sps:$4 sm:$0xff]   ;;  %v5778_v30 = vld [vmem:[%s7753_s7 + $0x84] ss:$28 sps:$4 sm:$0xff]  }
 0x363   : > { %v5773_v29 = vld [vmem:[%s7753_s7 + $0x438] ss:$28 sps:$4 sm:$0xff]  }
 0x365   : > { %4121 = vmatpush1.bf16.msra.mxu0 %v5692_v31  ;;  %4164 = vmatpush1.bf16.msra.mxu1 %v5695_v32  ;;  %v5781_v31 = vld [vmem:[%s7753_s7 + $0x404] ss:$28 sps:$4 sm:$0xff]  }
 0x366   : > { %4122 = vmatprep.subr.bf16.mxu0 %v5700_v33  ;;  %4165 = vmatprep.subr.bf16.mxu1 %v5703_v34  ;;  %v5776_v32 = vld [vmem:[%s7753_s7 + $0x80] ss:$28 sps:$4 sm:$0xff]   ;;  %v5784_v34 = vld [vmem:[%s7753_s7 + $0x4c] ss:$28 sps:$4 sm:$0xff]  }
 0x367   : > { %v5779_v33 = vld [vmem:[%s7753_s7 + $0x400] ss:$28 sps:$4 sm:$0xff]  }
 0x369   : > { %4123 = vmatpush2.bf16.msra.mxu0 %v5698_v35  ;;  %4166 = vmatpush2.bf16.msra.mxu1 %v5701_v36  ;;  %v5787_v35 = vld [vmem:[%s7753_s7 + $0x3cc] ss:$28 sps:$4 sm:$0xff]  }
 0x36a   : > { %4124 = vmatprep.subr.bf16.mxu0 %v5706_v37  ;;  %4167 = vmatprep.subr.bf16.mxu1 %v5709_v21  ;;  %v5782_v36 = vld [vmem:[%s7753_s7 + $0x48] ss:$28 sps:$4 sm:$0xff]   ;;  %v5790_v21 = vld [vmem:[%s7753_s7 + $0x14] ss:$28 sps:$4 sm:$0xff]  }
 0x36b   : > { %v5785_v37 = vld [vmem:[%s7753_s7 + $0x3c8] ss:$28 sps:$4 sm:$0xff]  }
 0x36d   : > { %4125 = vmatpush2.bf16.msra.mxu0 %v5704_v13  ;;  %4168 = vmatpush2.bf16.msra.mxu1 %v5707_v38  ;;  %v5793_v13 = vld [vmem:[%s7753_s7 + $0x394] ss:$28 sps:$4 sm:$0xff]  }
 0x36e   : > { %4126 = vmatprep.subr.bf16.mxu0 %v5712_v39  ;;  %4169 = vmatprep.subr.bf16.mxu1 %v5715_v54  ;;  %v5788_v38 = vld [vmem:[%s7753_s7 + $0x10] ss:$28 sps:$4 sm:$0xff]   ;;  %v5796_v54 = vld [vmem:[%s7753_s7 + $0x35c] ss:$28 sps:$4 sm:$0xff]  }
 0x36f   : > { %v5791_v39 = vld [vmem:[%s7753_s7 + $0x390] ss:$28 sps:$4 sm:$0xff]  }
 0x371   : > { %4127 = vmatpush2.bf16.msra.mxu0 %v5710_v23  ;;  %4170 = vmatpush2.bf16.msra.mxu1 %v5713_v26  ;;  %v5799_v23 = vld [vmem:[%s7753_s7 + $0x6dc] ss:$28 sps:$4 sm:$0xff]  }
 0x372   : > { %4128 = vmatprep.subr.bf16.mxu0 %v5718_v40  ;;  %4171 = vmatprep.subr.bf16.mxu1 %v5721_v41  ;;  %v5794_v26 = vld [vmem:[%s7753_s7 + $0x358] ss:$28 sps:$4 sm:$0xff]   ;;  %v5802_v41 = vld [vmem:[%s7753_s7 + $0x324] ss:$28 sps:$4 sm:$0xff]  }
 0x373   : > { %v5797_v40 = vld [vmem:[%s7753_s7 + $0x6d8] ss:$28 sps:$4 sm:$0xff]  }
 0x375   : > { %4129 = vmatpush2.bf16.msra.mxu0 %v5716_v42  ;;  %4172 = vmatpush2.bf16.msra.mxu1 %v5719_v12  ;;  %v5805_v42 = vld [vmem:[%s7753_s7 + $0x6a4] ss:$28 sps:$4 sm:$0xff]  }
 0x376   : > { %4130 = vmatprep.subr.bf16.mxu0 %v5724_v43  ;;  %4173 = vmatprep.subr.bf16.mxu1 %v5727_v45  ;;  %v5800_v12 = vld [vmem:[%s7753_s7 + $0x320] ss:$28 sps:$4 sm:$0xff]   ;;  %v5808_v45 = vld [vmem:[%s7753_s7 + $0x2ec] ss:$28 sps:$4 sm:$0xff]  }
 0x377   : > { %v5803_v43 = vld [vmem:[%s7753_s7 + $0x6a0] ss:$28 sps:$4 sm:$0xff]  }
 0x379   : > { %4131 = vmatpush2.bf16.msra.mxu0 %v5722_v46  ;;  %4174 = vmatpush2.bf16.msra.mxu1 %v5725_v48  ;;  %v5811_v46 = vld [vmem:[%s7753_s7 + $0x66c] ss:$28 sps:$4 sm:$0xff]  }
 0x37a   : > { %4132 = vmatprep.subr.bf16.mxu0 %v5730_v49  ;;  %4175 = vmatprep.subr.bf16.mxu1 %v5733_v50  ;;  %v5806_v48 = vld [vmem:[%s7753_s7 + $0x2e8] ss:$28 sps:$4 sm:$0xff]   ;;  %v5814_v50 = vld [vmem:[%s7753_s7 + $0x2b4] ss:$28 sps:$4 sm:$0xff]  }
 0x37b   : > { %v5809_v49 = vld [vmem:[%s7753_s7 + $0x668] ss:$28 sps:$4 sm:$0xff]  }
 0x37d   : > { %4133 = vmatpush2.bf16.msra.mxu0 %v5728_v51  ;;  %4176 = vmatpush2.bf16.msra.mxu1 %v5731_v52  ;;  %v5817_v51 = vld [vmem:[%s7753_s7 + $0x634] ss:$28 sps:$4 sm:$0xff]  }
 0x37e   : > { %4134 = vmatprep.subr.bf16.mxu0 %v5736_v53  ;;  %4177 = vmatprep.subr.bf16.mxu1 %v5739_v57  ;;  %v5812_v52 = vld [vmem:[%s7753_s7 + $0x2b0] ss:$28 sps:$4 sm:$0xff]   ;;  %v5820_v57 = vld [vmem:[%s7753_s7 + $0x27c] ss:$28 sps:$4 sm:$0xff]  }
 0x37f   : > { %v5815_v53 = vld [vmem:[%s7753_s7 + $0x630] ss:$28 sps:$4 sm:$0xff]  }
 0x381   : > { %4135 = vmatpush2.bf16.msra.mxu0 %v5734_v58  ;;  %4178 = vmatpush2.bf16.msra.mxu1 %v5737_v61  ;;  %v5823_v58 = vld [vmem:[%s7753_s7 + $0x5fc] ss:$28 sps:$4 sm:$0xff]  }
 0x382   : > { %4136 = vmatprep.subr.bf16.mxu0 %v5742_v62  ;;  %4179 = vmatprep.subr.bf16.mxu1 %v5745_v63  ;;  %v5818_v61 = vld [vmem:[%s7753_s7 + $0x278] ss:$28 sps:$4 sm:$0xff]   ;;  %v5826_v63 = vld [vmem:[%s7753_s7 + $0x244] ss:$28 sps:$4 sm:$0xff]  }
 0x383   : > { %v5821_v62 = vld [vmem:[%s7753_s7 + $0x5f8] ss:$28 sps:$4 sm:$0xff]  }
 0x385   : > { %4137 = vmatpush2.bf16.msra.mxu0 %v5740_v0  ;;  %4180 = vmatpush2.bf16.msra.mxu1 %v5743_v1  ;;  %v5829_v0 = vld [vmem:[%s7753_s7 + $0x5c4] ss:$28 sps:$4 sm:$0xff]  }
 0x386   : > { %4192 = vmatprep.subr.bf16.mxu0 %v5748_v3  ;;  %4235 = vmatprep.subr.bf16.mxu1 %v5751_v4  ;;  %v5824_v1 = vld [vmem:[%s7753_s7 + $0x240] ss:$28 sps:$4 sm:$0xff]   ;;  %v5832_v4 = vld [vmem:[%s7753_s7 + $0x20c] ss:$28 sps:$4 sm:$0xff]  }
 0x387   : > { %v5827_v3 = vld [vmem:[%s7753_s7 + $0x5c0] ss:$28 sps:$4 sm:$0xff]  }
 0x388   : > { %4139 = vmatmul.mubr.bf16.vlgmr.msra.gmra.mxu0 %v7167_v59  ;;  %4182 = vmatmul.mubr.bf16.vlgmr.msra.gmra.mxu1 %v7169_v60 }
 0x389   : > { %4193 = vmatpush1.bf16.msra.mxu0 %v5746_v7  ;;  %4224 = vmatprep.mubr.bf16.mxu0 %v7157_v55  ;;  %v5835_v7 = vld [vmem:[%s7753_s7 + $0x58c] ss:$28 sps:$4 sm:$0xff]  }
 0x38a   : > { %4236 = vmatpush1.bf16.msra.mxu1 %v5749_v9  ;;  %4267 = vmatprep.mubr.bf16.mxu1 %v7159_v56  ;;  %v5830_v9 = vld [vmem:[%s7753_s7 + $0x208] ss:$28 sps:$4 sm:$0xff]  }
 0x38b   : > { %4194 = vmatprep.subr.bf16.mxu0 %v5754_v10  ;;  %4237 = vmatprep.subr.bf16.mxu1 %v5757_v11  ;;  %v5833_v10 = vld [vmem:[%s7753_s7 + $0x588] ss:$28 sps:$4 sm:$0xff]   ;;  %v5838_v11 = vld [vmem:[%s7753_s7 + $0x1d4] ss:$28 sps:$4 sm:$0xff]  }
 0x38d   : > { %4195 = vmatpush1.bf16.msra.mxu0 %v5752_v14  ;;  %v5841_v14 = vld [vmem:[%s7753_s7 + $0x554] ss:$28 sps:$4 sm:$0xff]  }
 0x38e   : > { %4238 = vmatpush1.bf16.msra.mxu1 %v5755_v8  ;;  %4196 = vmatprep.subr.bf16.mxu0 %v5760_v15  ;;  %v5836_v8 = vld [vmem:[%s7753_s7 + $0x1d0] ss:$28 sps:$4 sm:$0xff]  }
 0x38f   : > { %4239 = vmatprep.subr.bf16.mxu1 %v5763_v16  ;;  %v5839_v15 = vld [vmem:[%s7753_s7 + $0x550] ss:$28 sps:$4 sm:$0xff]   ;;  %v5842_v16 = vld [vmem:[%s7753_s7 + $0x360] ss:$28 sps:$4 sm:$0xff]  }
 0x391   : > { %4197 = vmatpush1.bf16.msra.mxu0 %v5758_v17  ;;  %v5843_v17 = vld [vmem:[%s7753_s7 + $0x6e0] ss:$28 sps:$4 sm:$0xff]  }
 0x392   : > { %4240 = vmatpush1.bf16.msra.mxu1 %v5761_v18  ;;  %4198 = vmatprep.subr.bf16.mxu0 %v5766_v19  ;;  %v5844_v18 = vld [vmem:[%s7753_s7 + $0x1a0] ss:$28 sps:$4 sm:$0xff]  }
 0x393   : > { %4241 = vmatprep.subr.bf16.mxu1 %v5769_v20  ;;  %v5845_v19 = vld [vmem:[%s7753_s7 + $0x520] ss:$28 sps:$4 sm:$0xff]   ;;  %v5846_v20 = vld [vmem:[%s7753_s7 + $0x328] ss:$28 sps:$4 sm:$0xff]  }
 0x395   : > { %4199 = vmatpush1.bf16.msra.mxu0 %v5764_v22  ;;  %v5847_v22 = vld [vmem:[%s7753_s7 + $0x6a8] ss:$28 sps:$4 sm:$0xff]  }
 0x396   : > { %4242 = vmatpush1.bf16.msra.mxu1 %v5767_v24  ;;  %4200 = vmatprep.subr.bf16.mxu0 %v5772_v25  ;;  %v5848_v24 = vld [vmem:[%s7753_s7 + $0x168] ss:$28 sps:$4 sm:$0xff]  }
 0x397   : > { %4243 = vmatprep.subr.bf16.mxu1 %v5775_v27  ;;  %v5849_v25 = vld [vmem:[%s7753_s7 + $0x4e8] ss:$28 sps:$4 sm:$0xff]   ;;  %v5850_v27 = vld [vmem:[%s7753_s7 + $0x2f0] ss:$28 sps:$4 sm:$0xff]  }
 0x399   : > { %4201 = vmatpush1.bf16.msra.mxu0 %v5770_v28  ;;  %v5851_v28 = vld [vmem:[%s7753_s7 + $0x670] ss:$28 sps:$4 sm:$0xff]  }
 0x39a   : > { %4244 = vmatpush1.bf16.msra.mxu1 %v5773_v29  ;;  %4202 = vmatprep.subr.bf16.mxu0 %v5778_v30  ;;  %v5853_v29 = vld [vmem:[%s7753_s7 + $0x4b0] ss:$28 sps:$4 sm:$0xff]   ;;  %v5855_v30 = vld [vmem:[%s7753_s7 + $0x638] ss:$28 sps:$4 sm:$0xff]  }
 0x39b   : > { %4245 = vmatprep.subr.bf16.mxu1 %v5781_v31  ;;  %v5856_v31 = vld [vmem:[%s7753_s7 + $0xf8] ss:$28 sps:$4 sm:$0xff]  }
 0x39d   : > { %4203 = vmatpush1.bf16.msra.mxu0 %v5776_v32  ;;  %v5857_v32 = vld [vmem:[%s7753_s7 + $0x478] ss:$28 sps:$4 sm:$0xff]  }
 0x39e   : > { %4246 = vmatpush1.bf16.msra.mxu1 %v5779_v33  ;;  %4204 = vmatprep.subr.bf16.mxu0 %v5784_v34  ;;  %v5858_v33 = vld [vmem:[%s7753_s7 + $0x280] ss:$28 sps:$4 sm:$0xff]  }
 0x39f   : > { %4247 = vmatprep.subr.bf16.mxu1 %v5787_v35  ;;  %v5859_v34 = vld [vmem:[%s7753_s7 + $0x600] ss:$28 sps:$4 sm:$0xff]  }
 0x3a0   : > { %v5860_v35 = vld [vmem:[%s7753_s7 + $0xc0] ss:$28 sps:$4 sm:$0xff]  }
 0x3a1   : > { %4205 = vmatpush1.bf16.msra.mxu0 %v5782_v36  ;;  %v5861_v36 = vld [vmem:[%s7753_s7 + $0x440] ss:$28 sps:$4 sm:$0xff]  }
 0x3a2   : > { %4248 = vmatpush1.bf16.msra.mxu1 %v5785_v37  ;;  %4206 = vmatprep.subr.bf16.mxu0 %v5790_v21  ;;  %v5862_v37 = vld [vmem:[%s7753_s7 + $0x248] ss:$28 sps:$4 sm:$0xff]  }
 0x3a3   : > { %4249 = vmatprep.subr.bf16.mxu1 %v5793_v13  ;;  %v5863_v21 = vld [vmem:[%s7753_s7 + $0x5c8] ss:$28 sps:$4 sm:$0xff]  }
 0x3a4   : > { %v5864_v13 = vld [vmem:[%s7753_s7 + $0x88] ss:$28 sps:$4 sm:$0xff]  }
 0x3a5   : > { %4207 = vmatpush1.bf16.msra.mxu0 %v5788_v38  ;;  %v5865_v38 = vld [vmem:[%s7753_s7 + $0x408] ss:$28 sps:$4 sm:$0xff]  }
 0x3a6   : > { %4250 = vmatpush1.bf16.msra.mxu1 %v5791_v39  ;;  %4208 = vmatprep.subr.bf16.mxu0 %v5796_v54  ;;  %v5866_v39 = vld [vmem:[%s7753_s7 + $0x210] ss:$28 sps:$4 sm:$0xff]  }
 0x3a7   : > { %4251 = vmatprep.subr.bf16.mxu1 %v5799_v23  ;;  %v5867_v54 = vld [vmem:[%s7753_s7 + $0x590] ss:$28 sps:$4 sm:$0xff]  }
 0x3a8   : > { %v5868_v23 = vld [vmem:[%s7753_s7 + $0x50] ss:$28 sps:$4 sm:$0xff]  }
 0x3a9   : > { %4209 = vmatpush2.bf16.msra.mxu0 %v5794_v26  ;;  %v5869_v26 = vld [vmem:[%s7753_s7 + $0x3d0] ss:$28 sps:$4 sm:$0xff]  }
 0x3aa   : > { %4252 = vmatpush2.bf16.msra.mxu1 %v5797_v40  ;;  %4210 = vmatprep.subr.bf16.mxu0 %v5802_v41  ;;  %v5870_v40 = vld [vmem:[%s7753_s7 + $0x1d8] ss:$28 sps:$4 sm:$0xff]  }
 0x3ab   : > { %4253 = vmatprep.subr.bf16.mxu1 %v5805_v42  ;;  %v5871_v41 = vld [vmem:[%s7753_s7 + $0x558] ss:$28 sps:$4 sm:$0xff]  }
 0x3ac   : > { %v5872_v42 = vld [vmem:[%s7753_s7 + $0x18] ss:$28 sps:$4 sm:$0xff]  }
 0x3ad   : > { %4211 = vmatpush2.bf16.msra.mxu0 %v5800_v12  ;;  %v5873_v12 = vld [vmem:[%s7753_s7 + $0x398] ss:$28 sps:$4 sm:$0xff]  }
 0x3ae   : > { %4254 = vmatpush2.bf16.msra.mxu1 %v5803_v43  ;;  %4212 = vmatprep.subr.bf16.mxu0 %v5808_v45  ;;  %v7658_v43 = vld [vmem:[%s7754_s8] sm:$0x7f] }
 0x3af   : > { %4255 = vmatprep.subr.bf16.mxu1 %v5811_v46  ;;  %v2836_v45 = vrot.slane %v7658_v43, %v6836_v6  ;;  %v2840_v46 = vrot.slane %v7658_v43, %v6833_v5 }
 0x3b1   : > { %4213 = vmatpush2.bf16.msra.mxu0 %v5806_v48 }
 0x3b2   : > { %4256 = vmatpush2.bf16.msra.mxu1 %v5809_v49  ;;  %4214 = vmatprep.subr.bf16.mxu0 %v5814_v50 }
 0x3b3   : > { %4257 = vmatprep.subr.bf16.mxu1 %v5817_v51 }
 0x3b5   : > { %4215 = vmatpush2.bf16.msra.mxu0 %v5812_v52 }
 0x3b6   : > { %4258 = vmatpush2.bf16.msra.mxu1 %v5815_v53  ;;  %4216 = vmatprep.subr.bf16.mxu0 %v5820_v57 }
 0x3b7   : > { %4259 = vmatprep.subr.bf16.mxu1 %v5823_v58 }
 0x3b9   : > { %4217 = vmatpush2.bf16.msra.mxu0 %v5818_v61 }
 0x3ba   : > { %4260 = vmatpush2.bf16.msra.mxu1 %v5821_v62  ;;  %4218 = vmatprep.subr.bf16.mxu0 %v5826_v63 }
 0x3bb   : > { %4261 = vmatprep.subr.bf16.mxu1 %v5829_v0 }
 0x3bd   : > { %4219 = vmatpush2.bf16.msra.mxu0 %v5824_v1 }
 0x3be   : > { %4262 = vmatpush2.bf16.msra.mxu1 %v5827_v3  ;;  %4220 = vmatprep.subr.bf16.mxu0 %v5832_v4 }
 0x3bf   : > { %4263 = vmatprep.subr.bf16.mxu1 %v5835_v7 }
 0x3c1   : > { %4221 = vmatpush2.bf16.msra.mxu0 %v5830_v9 }
 0x3c2   : > { %4264 = vmatpush2.bf16.msra.mxu1 %v5833_v10  ;;  %4222 = vmatprep.subr.bf16.mxu0 %v5838_v11 }
 0x3c3   : > { %4265 = vmatprep.subr.bf16.mxu1 %v5841_v14 }
 0x3c5   : > { %4223 = vmatpush2.bf16.msra.mxu0 %v5836_v8 }
 0x3c6   : > { %4266 = vmatpush2.bf16.msra.mxu1 %v5839_v15  ;;  %5091 = vmatprep.subr.bf16.mxu0 %v5842_v16 }
 0x3c7   : > { %5113 = vmatprep.subr.bf16.mxu1 %v5843_v17 }
 0x3c8   : > { %4225 = vmatmul.mubr.bf16.vlgmr.msra.gmra.mxu0 %v7167_v59 }
 0x3c9   : > { %4268 = vmatmul.mubr.bf16.vlgmr.msra.gmra.mxu1 %v7169_v60  ;;  %5092 = vmatpush3.bf16.msra.mxu0 %v5844_v18 }
 0x3ca   : > { %4310 = vmatprep.mubr.bf16.mxu0 %v7157_v55  ;;  %5114 = vmatpush3.bf16.msra.mxu1 %v5845_v19  ;;  %v5852_v55 = vld [vmem:[%s7753_s7 + $0x130] ss:$28 sps:$4 sm:$0xff]  }
 0x3cb   : > { %4351 = vmatprep.mubr.bf16.mxu1 %v7159_v56  ;;  %5093 = vmatprep.subr.bf16.mxu0 %v5846_v20  ;;  %v5854_v56 = vld [vmem:[%s7753_s7 + $0x2b8] ss:$28 sps:$4 sm:$0xff]  }
 0x3cc   : > { %5115 = vmatprep.subr.bf16.mxu1 %v5847_v22 }
 0x3cd   : > { %5094 = vmatpush3.bf16.msra.mxu0 %v5848_v24  ;;  %v2844_v24 = vrot.slane %v7658_v43, %v6848_v47 }
 0x3ce   : > { %5116 = vmatpush3.bf16.msra.mxu1 %v5849_v25  ;;  %5095 = vmatprep.subr.bf16.mxu0 %v5850_v27  ;;  %v2848_v25 = vrot.slane %v7658_v43, %v6845_v44 }
 0x3cf   : > { %5117 = vmatprep.subr.bf16.mxu1 %v5851_v28 }
 0x3d1   : > { %5096 = vmatpush3.bf16.msra.mxu0 %v5852_v55 }
 0x3d2   : > { %5118 = vmatpush3.bf16.msra.mxu1 %v5853_v29  ;;  %5097 = vmatprep.subr.bf16.mxu0 %v5854_v56 }
 0x3d3   : > { %5119 = vmatprep.subr.bf16.mxu1 %v5855_v30 }
 0x3d5   : > { %5098 = vmatpush3.bf16.msra.mxu0 %v5856_v31 }
 0x3d6   : > { %5120 = vmatpush3.bf16.msra.mxu1 %v5857_v32  ;;  %5099 = vmatprep.subr.bf16.mxu0 %v5858_v33 }
 0x3d7   : > { %5121 = vmatprep.subr.bf16.mxu1 %v5859_v34 }
 0x3d9   : > { %5100 = vmatpush3.bf16.msra.mxu0 %v5860_v35 }
 0x3da   : > { %5122 = vmatpush3.bf16.msra.mxu1 %v5861_v36  ;;  %5101 = vmatprep.subr.bf16.mxu0 %v5862_v37 }
 0x3db   : > { %5123 = vmatprep.subr.bf16.mxu1 %v5863_v21 }
 0x3dd   : > { %5102 = vmatpush3.bf16.msra.mxu0 %v5864_v13 }
 0x3de   : > { %5124 = vmatpush3.bf16.msra.mxu1 %v5865_v38  ;;  %5103 = vmatprep.subr.bf16.mxu0 %v5866_v39 }
 0x3df   : > { %5125 = vmatprep.subr.bf16.mxu1 %v5867_v54 }
 0x3e1   : > { %5104 = vmatpush3.bf16.msra.mxu0 %v5868_v23 }
 0x3e2   : > { %5126 = vmatpush3.bf16.msra.mxu1 %v5869_v26  ;;  %5105 = vmatprep.subr.bf16.mxu0 %v5870_v40 }
 0x3e3   : > { %5127 = vmatprep.subr.bf16.mxu1 %v5871_v41 }
 0x3e5   : > { %5106 = vmatpush3.bf16.msra.mxu0 %v5872_v42 }
 0x3e6   : > { %5128 = vmatpush3.bf16.msra.mxu1 %v5873_v12 }
 0x3e8   : > { %4311 = vmatmul.mubr.bf16.vlgmr.msra.gmra.mxu0 %v7167_v59 }
 0x3e9   : > { %4352 = vmatmul.mubr.bf16.vlgmr.msra.gmra.mxu1 %v7169_v60 }
 0x408   : > { %v4054_v48 = vpop.f32.mrf.mxu0  ;;  %v4097_v49 = vpop.f32.mrf.mxu1 }
 0x409   : > { %v4055_v50 = vadd.f32 %v4054_v48, %v2836_v45 }
 0x40a   : > { %v4056_v51 = vpop.f32.mrf.mxu0  ;;  %v4099_v52 = vpop.f32.mrf.mxu1 }
 0x40b   : > { %v4098_v53 = vadd.f32 %v4097_v49, %v4055_v50  ;;  %v4057_v59 = vadd.f32 %v4056_v51, %v2840_v46 }
 0x40c   : > { %v4058_v57 = vpop.f32.mrf.mxu0  ;;  %v4101_v60 = vpop.f32.mrf.mxu1 }
 0x40d   : > { %v5028_v58 = vmul.f32 -1.442695, %v4098_v53  ;;  %v4100_v61 = vadd.f32 %v4099_v52, %v4057_v59  ;;  %v4059_v62 = vadd.f32 %v4058_v57, %v2836_v45  ;;  %v2851_v52 = vsub.s32 4, %v6830_v2 }
 0x40e   : > { %v4060_v63 = vpop.f32.mrf.mxu0  ;;  %v4103_v3 = vpop.f32.mrf.mxu1  ;;  %v2855_v53 = vsub.s32 5, %v6830_v2 }
 0x40f   : > { %5874 = vpow2.f32 %v5028_v58  ;;  %v5029_v0 = vmul.f32 -1.442695, %v4100_v61  ;;  %v4102_v1 = vadd.f32 %v4101_v60, %v4059_v62  ;;  %v4061_v6 = vadd.f32 %v4060_v63, %v2840_v46 }
 0x410   : > { %v2852_v59 = vrot.slane %v7658_v43, %v2851_v52  ;;  %v2856_v57 = vrot.slane %v7658_v43, %v2855_v53 }
 0x411   : > { %5876 = vpow2.f32 %v5029_v0  ;;  %v5035_v5 = vmul.f32 -1.442695, %v4102_v1  ;;  %v4104_v4 = vadd.f32 %v4103_v3, %v4061_v6 }
 0x413   : > { %5878 = vpow2.f32 %v5035_v5  ;;  %v5036_v7 = vmul.f32 -1.442695, %v4104_v4 }
 0x415   : > { %5880 = vpow2.f32 %v5036_v7 }
 0x41c   : > { %v5875_v9 = vpop.eup %5874 }
 0x41d   : > { %v4402_v10 = vadd.f32 1.0, %v5875_v9 }
 0x41e   : > { %v5877_v11 = vpop.eup %5876 }
 0x41f   : > { %5882 = vrcp.f32 %v4402_v10  ;;  %v4403_v14 = vadd.f32 1.0, %v5877_v11 }
 0x420   : > { %v5879_v8 = vpop.eup %5878 }
 0x421   : > { %5884 = vrcp.f32 %v4403_v14  ;;  %v4409_v15 = vadd.f32 1.0, %v5879_v8 }
 0x422   : > { %v5881_v16 = vpop.eup %5880 }
 0x423   : > { %5886 = vrcp.f32 %v4409_v15  ;;  %v4410_v17 = vadd.f32 1.0, %v5881_v16 }
 0x425   : > { %5888 = vrcp.f32 %v4410_v17 }
 0x42c   : > { %v5883_v18 = vpop.eup %5882 }
 0x42d   : > { %4444 = vst [vmem:[%s7667_s25] sm:$0xff] %v5883_v18 }
 0x42e   : > { %v5885_v19 = vpop.eup %5884 }
 0x42f   : > { %4445 = vst [vmem:[%s7667_s25 + $0x8] sm:$0xff] %v5885_v19 }
 0x430   : > { %v5887_v20 = vpop.eup %5886 }
 0x431   : > { %4451 = vst [vmem:[%s7667_s25 + $0x38] sm:$0xff] %v5887_v20 }
 0x432   : > { %v5889_v22 = vpop.eup %5888 }
 0x433   : > { %4452 = vst [vmem:[%s7667_s25 + $0x40] sm:$0xff] %v5889_v22 }
 0x448   : > { %v4140_v27 = vpop.f32.mrf.mxu0  ;;  %v4183_v28 = vpop.f32.mrf.mxu1 }
 0x449   : > { %v4141_v55 = vadd.f32 %v4140_v27, %v2844_v24 }
 0x44a   : > { %v4142_v29 = vpop.f32.mrf.mxu0  ;;  %v4185_v56 = vpop.f32.mrf.mxu1 }
 0x44b   : > { %v4184_v30 = vadd.f32 %v4183_v28, %v4141_v55  ;;  %v4143_v31 = vadd.f32 %v4142_v29, %v2848_v25  ;;  %v2859_v55 = vsub.s32 6, %v6830_v2 }
 0x44c   : > { %v4144_v32 = vpop.f32.mrf.mxu0  ;;  %v4187_v33 = vpop.f32.mrf.mxu1 }
 0x44d   : > { %v5030_v34 = vmul.f32 -1.442695, %v4184_v30  ;;  %v4186_v35 = vadd.f32 %v4185_v56, %v4143_v31  ;;  %v4145_v36 = vadd.f32 %v4144_v32, %v2844_v24  ;;  %v2860_v30 = vrot.slane %v7658_v43, %v2859_v55 }
 0x44e   : > { %v4146_v37 = vpop.f32.mrf.mxu0  ;;  %v4189_v38 = vpop.f32.mrf.mxu1 }
 0x44f   : > { %5890 = vpow2.f32 %v5030_v34  ;;  %v5031_v21 = vmul.f32 -1.442695, %v4186_v35  ;;  %v4188_v13 = vadd.f32 %v4187_v33, %v4145_v36  ;;  %v4147_v47 = vadd.f32 %v4146_v37, %v2848_v25 }
 0x451   : > { %5892 = vpow2.f32 %v5031_v21  ;;  %v5037_v44 = vmul.f32 -1.442695, %v4188_v13  ;;  %v4190_v39 = vadd.f32 %v4189_v38, %v4147_v47 }
 0x453   : > { %5894 = vpow2.f32 %v5037_v44  ;;  %v5038_v54 = vmul.f32 -1.442695, %v4190_v39 }
 0x455   : > { %5896 = vpow2.f32 %v5038_v54 }
 0x45c   : > { %v5891_v23 = vpop.eup %5890 }
 0x45d   : > { %v4404_v26 = vadd.f32 1.0, %v5891_v23 }
 0x45e   : > { %v5893_v40 = vpop.eup %5892 }
 0x45f   : > { %5898 = vrcp.f32 %v4404_v26  ;;  %v4405_v41 = vadd.f32 1.0, %v5893_v40 }
 0x460   : > { %v5895_v42 = vpop.eup %5894 }
 0x461   : > { %5900 = vrcp.f32 %v4405_v41  ;;  %v4411_v12 = vadd.f32 1.0, %v5895_v42 }
 0x462   : > { %v5897_v45 = vpop.eup %5896 }
 0x463   : > { %5902 = vrcp.f32 %v4411_v12  ;;  %v4412_v46 = vadd.f32 1.0, %v5897_v45 }
 0x465   : > { %5904 = vrcp.f32 %v4412_v46 }
 0x46c   : > { %v5899_v48 = vpop.eup %5898 }
 0x46d   : > { %4446 = vst [vmem:[%s7667_s25 + $0x10] sm:$0xff] %v5899_v48 }
 0x46e   : > { %v5901_v49 = vpop.eup %5900 }
 0x46f   : > { %4447 = vst [vmem:[%s7667_s25 + $0x18] sm:$0xff] %v5901_v49 }
 0x470   : > { %v5903_v50 = vpop.eup %5902 }
 0x471   : > { %4453 = vst [vmem:[%s7667_s25 + $0x48] sm:$0xff] %v5903_v50 }
 0x472   : > { %v5905_v51 = vpop.eup %5904 }
 0x473   : > { %4454 = vst [vmem:[%s7667_s25 + $0x50] sm:$0xff] %v5905_v51 }
 0x488   : > { %v4226_v60 = vpop.f32.mrf.mxu0 }
 0x489   : > { %v4227_v58 = vadd.f32 %v4226_v60, %v2852_v59  ;;  %v4269_v61 = vpop.f32.mrf.mxu1 }
 0x48a   : > { %v4228_v62 = vpop.f32.mrf.mxu0 }
 0x48b   : > { %v4270_v63 = vadd.f32 %v4269_v61, %v4227_v58  ;;  %v4229_v0 = vadd.f32 %v4228_v62, %v2856_v57  ;;  %v4271_v1 = vpop.f32.mrf.mxu1 }
 0x48c   : > { %v4230_v6 = vpop.f32.mrf.mxu0 }
 0x48d   : > { %v5032_v3 = vmul.f32 -1.442695, %v4270_v63  ;;  %v4272_v5 = vadd.f32 %v4271_v1, %v4229_v0  ;;  %v4231_v4 = vadd.f32 %v4230_v6, %v2852_v59  ;;  %v4273_v7 = vpop.f32.mrf.mxu1 }
 0x48e   : > { %v4232_v9 = vpop.f32.mrf.mxu0 }
 0x48f   : > { %5906 = vpow2.f32 %v5032_v3  ;;  %v5033_v10 = vmul.f32 -1.442695, %v4272_v5  ;;  %v4274_v11 = vadd.f32 %v4273_v7, %v4231_v4  ;;  %v4233_v14 = vadd.f32 %v4232_v9, %v2856_v57  ;;  %v4275_v8 = vpop.f32.mrf.mxu1 }
 0x491   : > { %5908 = vpow2.f32 %v5033_v10  ;;  %v5039_v15 = vmul.f32 -1.442695, %v4274_v11  ;;  %v4276_v16 = vadd.f32 %v4275_v8, %v4233_v14 }
 0x493   : > { %5910 = vpow2.f32 %v5039_v15  ;;  %v5040_v17 = vmul.f32 -1.442695, %v4276_v16 }
 0x495   : > { %5912 = vpow2.f32 %v5040_v17 }
 0x49c   : > { %v5907_v18 = vpop.eup %5906 }
 0x49d   : > { %v4406_v19 = vadd.f32 1.0, %v5907_v18 }
 0x49e   : > { %v5909_v20 = vpop.eup %5908 }
 0x49f   : > { %5914 = vrcp.f32 %v4406_v19  ;;  %v4407_v22 = vadd.f32 1.0, %v5909_v20 }
 0x4a0   : > { %v5911_v24 = vpop.eup %5910 }
 0x4a1   : > { %5916 = vrcp.f32 %v4407_v22  ;;  %v4413_v25 = vadd.f32 1.0, %v5911_v24 }
 0x4a2   : > { %v5913_v27 = vpop.eup %5912 }
 0x4a3   : > { %5918 = vrcp.f32 %v4413_v25  ;;  %v4414_v28 = vadd.f32 1.0, %v5913_v27 }
 0x4a5   : > { %5920 = vrcp.f32 %v4414_v28 }
 0x4a8   : > { %v5107_v29 = vpop.f32.mrf.mxu0 }
 0x4a9   : > { %v5129_v56 = vpop.f32.mrf.mxu1 }
 0x4aa   : > { %v5108_v31 = vpop.f32.mrf.mxu0 }
 0x4ab   : > { %v5109_v32 = vadd.f32 %v5108_v31, %v5107_v29  ;;  %v5130_v33 = vpop.f32.mrf.mxu1 }
 0x4ac   : > { %v5915_v34 = vpop.eup %5914  ;;  %v5110_v35 = vpop.f32.mrf.mxu0  ;;  %v5131_v37 = vadd.f32 %v5130_v33, %v5129_v56 }
 0x4ad   : > { %4448 = vst [vmem:[%s7667_s25 + $0x20] sm:$0xff] %v5915_v34  ;;  %v4313_v36 = vadd.f32 %v5109_v32, %v2860_v30  ;;  %v5132_v21 = vpop.f32.mrf.mxu1 }
 0x4ae   : > { %v5917_v13 = vpop.eup %5916  ;;  %v5111_v47 = vpop.f32.mrf.mxu0 }
 0x4af   : > { %4449 = vst [vmem:[%s7667_s25 + $0x28] sm:$0xff] %v5917_v13  ;;  %v4354_v38 = vadd.f32 %v5131_v37, %v4313_v36  ;;  %v5112_v2 = vadd.f32 %v5111_v47, %v5110_v35  ;;  %v5133_v44 = vpop.f32.mrf.mxu1 }
 0x4b0   : > { %v5919_v39 = vpop.eup %5918  ;;  %v5134_v23 = vadd.f32 %v5133_v44, %v5132_v21 }
 0x4b1   : > { %4455 = vst [vmem:[%s7667_s25 + $0x58] sm:$0xff] %v5919_v39  ;;  %v5034_v43 = vmul.f32 -1.442695, %v4354_v38  ;;  %v4316_v54 = vadd.f32 %v5112_v2, %v2860_v30 }
 0x4b2   : > { %v5921_v26 = vpop.eup %5920 }
 0x4b3   : > { %4456 = vst [vmem:[%s7667_s25 + $0x60] sm:$0xff] %v5921_v26  ;;  %5922 = vpow2.f32 %v5034_v43  ;;  %v4357_v40 = vadd.f32 %v5134_v23, %v4316_v54 }
 0x4b5   : > { %v5041_v41 = vmul.f32 -1.442695, %v4357_v40 }
 0x4b7   : > { %5924 = vpow2.f32 %v5041_v41 }
 0x4c0   : > { %v5923_v42 = vpop.eup %5922 }
 0x4c1   : > { %v4408_v12 = vadd.f32 1.0, %v5923_v42 }
 0x4c3   : > { %5926 = vrcp.f32 %v4408_v12 }
 0x4c4   : > { %v5925_v45 = vpop.eup %5924 }
 0x4c5   : > { %v4415_v46 = vadd.f32 1.0, %v5925_v45 }
 0x4c7   : > { %5928 = vrcp.f32 %v4415_v46 }
 0x4d0   : > { %v5927_v48 = vpop.eup %5926 }
 0x4d1   : > { %4450 = vst.msk [vmem:[%s7667_s25 + $0x30] sm:$0xff] %vm1557_vm0, %v5927_v48 }
 0x4d4   : > { %v5929_v49 = vpop.eup %5928 }
 0x4d5   : > { %4457 = vst.msk [vmem:[%s7667_s25 + $0x68] sm:$0xff] %vm1557_vm0, %v5929_v49 }
 0x4d6   : > { %5943 = shalt.err (!%p5940_p3)
}
 0x4d7   : > { %s5944_s24 = scalar_lea.hbm %s7700_s28, 1792  ;;  %s5948_s17 = scalar_lea.hbm %s7755_s9, 5376 }
 0x4d8   : > { %p5945_p4 = scmp.ne.s32.totalorder %s7700_s28, %s5944_s24  ;;  %p5949_p9 = scmp.lt.s32.totalorder %s7700_s28, %s7755_s9 }
 0x4d9   : > { %p5950_p10 = scmp.lt.s32.totalorder %s5948_s17, %s5944_s24 }
 0x4da   : > { %p5946_p7 = pnand %p5945_p4, %p6084_p5 }
 0x4db   : > { %p5951_p11 = por %p5950_p10, %p5949_p9 }
 0x4dc   : > { %p5947_p8 = pneg %p5946_p7 }
 0x4de   : > { %p5952_p12 = pnand %p5951_p11, %p5947_p8 }
 0x4e0   : > { %5955 = shalt.err (!%p5952_p12)
}
 0x4e1   : > { %s5994_s13 = smov 896   ;;  %s5995_s21 = smov 56  }
 0x4e2   : > { %5138 = dma.vmem_to_hbm [thread:$0]  (%p6084_p5), %s7695_s26, 1792, %s7700_s28, %s7706_s14, %s5994_s13, %s5994_s13, %s5995_s21  }
 0x4e3 PF: > { %p5144_p13 = scmp.ge.s32.totalorder %s5990_s12, 2  ;;  %s4488_s22 = sand.u32 1, %s5978_s30  }
 0x4e4   : > { %s4489_s23 = scalar_lea.sflag [#allocation3], %s4488_s22 }
 0x4e5   : > { %p5141_p0 = pnand %p5144_p13, %p6088_p6 }
 0x4e7   : > { %p5142_p1 = pneg %p5141_p0 }
 0x4e9   : > { %5973 = dma.done.wait (%p5142_p1), %s4489_s23, 1792  }
 0x4ea   : > { %5975 = vsyncadd (%p5142_p1), %s4489_s23, 4294965504  ;;  %p19_p2 = scmp.ge.s32.totalorder %s6071_s15, 5   ;;  %s7758_s30 = smov %s5982_s10 }
 0x4eb   : > { %s7759_s10 = smov %s5986_s11  ;;  %s7760_s11 = smov %s6082_s18 }
 0x4ec   : > { %s7761_s12 = smov %s6071_s15  ;;  %21 = sbr.rel (!%p19_p2) target bundleno = 3 (0x3), region = 91 }
 0x4f1   :  { %4494 = vsyncpa [#allocation3], 1 }
 0x4f2   :  { %4496 = vsyncpa [#allocation3 + $0x1], 1 }

</bundles_post_ra>
